<compile_context>
chip_gen: v7x
topology: tpu7x:2x2x1
jax: 0.10.0
libtpu: 0.0.40
codegen_flags: <defaults>
</compile_context>

<pallas_src>
import functools

import jax
import jax.numpy as jnp
from jax import lax
from jax.experimental import pallas as pl
from jax.experimental.pallas import tpu as pltpu


def _mga_kernel(x_ref, w_ref, rows_ref, W1T_ref, Wfold_ref, Wa_ref, o_ref,
                *, heads, bt, hw, hwp, mxu_precision):
    f32 = jnp.float32
    C, Cgp1 = Wfold_ref.shape
    Cg = Cgp1 - 1
    Ch = C // heads
    pad = hwp - hw                                   # static python int

    x = x_ref[0]                                     # (C, Bt*HWp), matmul dtype
    w_head = w_ref[...]                              # (Ch, 1) conv_mask weight (shared)
    rows = rows_ref[...]                             # (3, Cg): [b1, ln1_w, ln1_b]
    b1, g1, beta1 = rows[0:1, :], rows[1:2, :], rows[2:3, :]
    W1T = W1T_ref[...]                               # (C, Cg)
    Wf = Wfold_ref[...]                              # (C, Cg+1): [Wb@W2 | Wb@b2+b_cat]
    Wfold, bfold = Wf[:, :Cg], Wf[:, Cg:Cg + 1]

    # ---- concat_conv main branch: the one real MXU matmul, over all Bt images ----
    out_all = jnp.dot(Wa_ref[...], x, preferred_element_type=f32,
                      precision=mxu_precision)       # (C, Bt*HWp) f32

    if pad:
        lane_valid = lax.broadcasted_iota(jnp.int32, (1, hwp), 1) < hw

    inv_n = 1.0 / float(C * hw)

    for b in range(bt):                              # Bt is small & static: unrolled
        lo = b * hwp
        xb = x[:, lo:lo + hwp].astype(f32)           # (C, HWp)

        # ---- spatial_pool: conv_mask logits + softmax + context, then W1 ----
        # conv_mask bias is constant over HW -> softmax-invariant -> dropped.
        # The w multiply is fused into the segmented reduce (no (C,HW) temp).
        if Ch % 8 == 0:
            # Layout-preserving head split; softmax vectorized across heads
            # (one EUP exp / reciprocal pass, one XLU lane-reduce pass).
            xb3 = xb.reshape(heads, Ch, hwp)
            logits = jnp.sum(xb3 * w_head[None, :, :], axis=1)        # (heads, HWp)
            if pad:
                logits = jnp.where(lane_valid, logits, -jnp.inf)
            m = jnp.max(logits, axis=-1, keepdims=True)               # (heads, 1)
            e = jnp.exp(logits - m)
            d = jnp.sum(e, axis=-1, keepdims=True)
            inv = pl.reciprocal(d, approx=True)                       # EUP
            inv = inv * (2.0 - d * inv)                               # Newton -> f32
            p = e * inv                                               # (heads, HWp)
            v = b1                                                    # (1, Cg)
            for h in range(heads):
                sl = slice(h * Ch, (h + 1) * Ch)
                ctx_h = jnp.sum(xb[sl, :] * p[h:h + 1, :],
                                axis=-1, keepdims=True)               # (Ch, 1)
                v = v + jnp.sum(W1T[sl, :] * ctx_h, axis=0, keepdims=True)
        else:
            # Fallback for Ch not a multiple of the 8-sublane tile (tiny demo
            # shapes only); per-head pipeline, still fully VPU/XLU/EUP.
            v = b1
            for h in range(heads):
                sl = slice(h * Ch, (h + 1) * Ch)
                logit = jnp.sum(xb[sl, :] * w_head, axis=0, keepdims=True)  # (1, HWp)
                if pad:
                    logit = jnp.where(lane_valid, logit, -jnp.inf)
                m = jnp.max(logit, axis=-1, keepdims=True)
                e = jnp.exp(logit - m)
                d = jnp.sum(e, axis=-1, keepdims=True)
                inv = pl.reciprocal(d, approx=True)
                inv = inv * (2.0 - d * inv)
                p_h = e * inv                                          # (1, HWp)
                ctx_h = jnp.sum(xb[sl, :] * p_h, axis=-1, keepdims=True)
                v = v + jnp.sum(W1T[sl, :] * ctx_h, axis=0, keepdims=True)

        # ---- LayerNorm([Cg,1,1]) + ReLU + folded (Wb @ W2) second conv ----
        mu = jnp.mean(v, keepdims=True)
        var = jnp.mean((v - mu) ** 2, keepdims=True)
        vn = (v - mu) * lax.rsqrt(var + 1e-5) * g1 + beta1
        vn = jnp.maximum(vn, 0.0)                                      # (1, Cg)
        cb = jnp.sum(Wfold * vn, axis=-1, keepdims=True) + bfold       # (C, 1)

        ob = out_all[:, lo:lo + hwp] + cb                              # (C, HWp)

        # ---- F.layer_norm over [C,H,W] (no affine) + ReLU ----
        # Single fused sum / sum-of-squares pass.  Padded columns of out_all are
        # exactly 0 (x was zero-padded), so their contribution (== cb per row) is
        # removed analytically instead of with a full-tile mask sweep.
        s = jnp.sum(ob, keepdims=True)
        ss = jnp.sum(ob * ob, keepdims=True)
        if pad:
            s = s - float(pad) * jnp.sum(cb, keepdims=True)
            ss = ss - float(pad) * jnp.sum(cb * cb, keepdims=True)
        mu2 = s * inv_n
        var2 = jnp.maximum(ss * inv_n - mu2 * mu2, 0.0)
        o_ref[0, :, lo:lo + hwp] = jnp.maximum(
            (ob - mu2) * lax.rsqrt(var2 + 1e-5), 0.0)


def multi_aspect_gc_attention(x_nchw, params, heads, *,
                              matmul_dtype=jnp.bfloat16, batch_tile=8):
    """Pallas-TPU forward matching _MultiAspectGCAttention.forward."""
    B, C, H, W = x_nchw.shape
    HW = H * W
    HWp = ((HW + 127) // 128) * 128                  # lane-dense last dim
    Ch = C // heads
    f32 = jnp.float32
    hp = dict(precision=lax.Precision.HIGHEST)

    # Largest divisor of B that is <= batch_tile: images per grid step.
    Bt = max(d for d in range(1, min(batch_tile, B) + 1) if B % d == 0)
    nb = B // Bt

    xd = jnp.dtype(matmul_dtype)
    use_f32 = xd == jnp.dtype(jnp.float32)

    # Activations travel in the matmul dtype (bf16 fast path halves HBM bytes);
    # pack Bt images side-by-side on the lane axis: (nb, C, Bt*HWp).
    x = x_nchw.reshape(B, C, HW).astype(xd)
    if HWp != HW:
        x = jnp.pad(x, ((0, 0), (0, 0), (0, HWp - HW)))
    x = x.reshape(nb, Bt, C, HWp).transpose(0, 2, 1, 3).reshape(nb, C, Bt * HWp)

    # conv_mask weight (shared across heads); bias dropped (softmax-invariant).
    w_head = params["w_mask"].reshape(Ch, 1).astype(f32)
    rows = jnp.stack([params["b1"], params["ln1_w"], params["ln1_b"]]).astype(f32)
    W1T = params["W1"].astype(f32).T                                    # (C, Cg)

    Wcat = params["W_cat"].astype(f32)
    Wa, Wb = Wcat[:, :C], Wcat[:, C:]
    # Fold Wb into the second MLP layer (exact up to f32 rounding, done once here):
    #   Wb @ (W2 @ vn + b2) + b_cat == (Wb @ W2) @ vn + (Wb @ b2 + b_cat)
    Wfold = jnp.einsum("oc,cg->og", Wb, params["W2"].astype(f32), **hp)  # (C, Cg)
    bfold = (jnp.einsum("oc,c->o", Wb, params["b2"].astype(f32), **hp)
             + params["b_cat"].astype(f32)).reshape(C, 1)
    Wfold_aug = jnp.concatenate([Wfold, bfold], axis=1)                  # (C, Cg+1)
    Wa = Wa.astype(xd)

    kernel = functools.partial(
        _mga_kernel, heads=heads, bt=Bt, hw=HW, hwp=HWp,
        mxu_precision=lax.Precision.HIGHEST if use_f32 else None)

    # VMEM budget: double-buffered activation blocks + single-buffered weights +
    # in-kernel working set, capped below physical VMEM (v7x has only 64 MiB/TC).
    blk_in = Bt * C * HWp * xd.itemsize
    blk_out = Bt * C * HWp * 4
    param_b = ((w_head.size + rows.size + W1T.size + Wfold_aug.size) * 4
               + Wa.size * xd.itemsize)
    work = blk_out + 2 * C * HWp * 4 + 8 * heads * HWp * 4
    need = 2 * (blk_in + blk_out) + param_b + work
    try:
        phys_vmem = int(pltpu.get_tpu_info().vmem_capacity_bytes)
    except Exception:
        phys_vmem = 64 * 1024 * 1024                 # conservative (v7x floor)
    cap = (phys_vmem * 3) // 4                       # headroom for compiler scratch
    vmem_limit = int(min(max(need * 3 // 2, 32 * 1024 * 1024), cap))

    def run(single_buffer_params):
        def invariant(arr):
            nd = arr.ndim
            kwargs = {}
            if single_buffer_params:
                # Grid-invariant operand: fetched once, keep only one VMEM copy.
                kwargs["pipeline_mode"] = pl.Buffered(1)
            return pl.BlockSpec(arr.shape, lambda b, _nd=nd: (0,) * _nd, **kwargs)

        return pl.pallas_call(
            kernel,
            out_shape=jax.ShapeDtypeStruct((nb, C, Bt * HWp), jnp.float32),
            grid_spec=pltpu.PrefetchScalarGridSpec(
                num_scalar_prefetch=0,
                grid=(nb,),
                in_specs=[
                    pl.BlockSpec((1, C, Bt * HWp), lambda b: (b, 0, 0)),
                    invariant(w_head), invariant(rows), invariant(W1T),
                    invariant(Wfold_aug), invariant(Wa),
                ],
                out_specs=pl.BlockSpec((1, C, Bt * HWp), lambda b: (b, 0, 0)),
            ),
            compiler_params=pltpu.CompilerParams(
                dimension_semantics=("parallel",),
                vmem_limit_bytes=vmem_limit,
            ),
        )(x, w_head, rows, W1T, Wfold_aug, Wa)

    try:
        out = run(True)
    except Exception:
        # Fallback if this JAX version rejects pipeline_mode=pl.Buffered(1):
        # default double-buffering of the grid-invariant operands.
        out = run(False)

    out = (out.reshape(nb, C, Bt, HWp).transpose(0, 2, 1, 3)
              .reshape(B, C, HWp)[:, :, :HW])
    return out.reshape(B, C, H, W)


def reference(x, params, heads):
    """Pure-JAX f32 reference matching the PyTorch forward semantics."""
    B, C, H, W = x.shape
    Ch = C // heads
    HW = H * W
    hp = dict(precision=lax.Precision.HIGHEST)
    xh = x.reshape(B * heads, Ch, HW)
    logits = jnp.einsum("c,bcs->bs", params["w_mask"], xh, **hp) + params["b_mask"][0]
    p = jax.nn.softmax(logits, axis=-1)
    ctx = jnp.einsum("bcs,bs->bc", xh, p, **hp).reshape(B, C)
    v = jnp.einsum("bc,gc->bg", ctx, params["W1"], **hp) + params["b1"]
    mu = jnp.mean(v, axis=-1, keepdims=True)
    var = jnp.mean((v - mu) ** 2, axis=-1, keepdims=True)
    vn = (v - mu) / jnp.sqrt(var + 1e-5) * params["ln1_w"] + params["ln1_b"]
    vn = jnp.maximum(vn, 0.0)
    term = jnp.einsum("bg,cg->bc", vn, params["W2"], **hp) + params["b2"]
    xf = x.reshape(B, C, HW)
    Wcat = params["W_cat"]
    out = (jnp.einsum("oc,bcs->bos", Wcat[:, :C], xf, **hp)
           + jnp.einsum("oc,bc->bo", Wcat[:, C:], term, **hp)[:, :, None]
           + params["b_cat"][None, :, None])
    mu2 = jnp.mean(out, axis=(1, 2), keepdims=True)
    var2 = jnp.mean((out - mu2) ** 2, axis=(1, 2), keepdims=True)
    out = (out - mu2) / jnp.sqrt(var2 + 1e-5)
    out = jnp.maximum(out, 0.0)
    return out.reshape(B, C, H, W)


def _make_params(key, C, heads, ratio):
    Ch = C // heads
    Cg = int(C * ratio)
    ks = jax.random.split(key, 10)
    return {
        "w_mask": 0.5 * jax.random.normal(ks[0], (Ch,), jnp.float32),     # conv_mask
        "b_mask": 0.1 * jax.random.normal(ks[1], (1,), jnp.float32),
        "W1":     0.5 * jax.random.normal(ks[2], (Cg, C), jnp.float32),   # mlp conv 1
        "b1":     0.1 * jax.random.normal(ks[3], (Cg,), jnp.float32),
        "ln1_w":  1.0 + 0.1 * jax.random.normal(ks[4], (Cg,), jnp.float32),
        "ln1_b":  0.1 * jax.random.normal(ks[5], (Cg,), jnp.float32),
        "W2":     0.5 * jax.random.normal(ks[6], (C, Cg), jnp.float32),   # mlp conv 2
        "b2":     0.1 * jax.random.normal(ks[7], (C,), jnp.float32),
        "W_cat":  0.5 * jax.random.normal(ks[8], (C, 2 * C), jnp.float32),  # concat_conv
        "b_cat":  0.1 * jax.random.normal(ks[9], (C,), jnp.float32),
    }


if __name__ == "__main__":
    key = jax.random.PRNGKey(0)

    # (B, C, H, W, heads, ratio):
    #  1) original small case (HW already a multiple of 128, Ch<8 fallback path)
    #  2) 7x7 spatial (real deep-stage aspect): lane padding + Bt=4 image packing
    #  3) Ch % 8 == 0: layout-preserving head reshape (vectorized softmax) + padding
    cases = [
        (2, 4, 16, 16, 2, 2.0),
        (4, 16, 7, 7, 4, 0.5),
        (2, 32, 10, 10, 4, 0.25),
    ]
    for idx, (B, C, H, W, heads, ratio) in enumerate(cases):
        kp, kx, key = jax.random.split(key, 3)
        params = _make_params(kp, C, heads, ratio)
        x = jax.random.normal(kx, (B, C, H, W), jnp.float32)
        ref = reference(x, params, heads)

        # 1) f32/HIGHEST mode: tight numerical check against the reference.
        out_f32 = jax.block_until_ready(
            multi_aspect_gc_attention(x, params, heads, matmul_dtype=jnp.float32))
        assert out_f32.shape == (B, C, H, W)
        assert jnp.allclose(out_f32, ref, atol=1e-3, rtol=1e-3), \
            (idx, float(jnp.max(jnp.abs(out_f32 - ref))))

        # 2) default fast path: bf16 activations/weights, f32 accumulation.
        out_bf16 = jax.block_until_ready(
            multi_aspect_gc_attention(x, params, heads))
        assert out_bf16.shape == (B, C, H, W)
        assert jnp.allclose(out_bf16, ref, atol=3e-2, rtol=3e-2), \
            (idx, float(jnp.max(jnp.abs(out_bf16 - ref))))

    print("KERNEL_OK")
</pallas_src>

<mosaic_0001>
module attributes {stable_mosaic.version = 11 : i64} {
  func.func @_mga_kernel(%arg0: i32, %arg1: memref<1x4x512xf32, #tpu.memory_space<vmem>>, %arg2: memref<2x1xf32, #tpu.memory_space<vmem>>, %arg3: memref<3x8xf32, #tpu.memory_space<vmem>>, %arg4: memref<4x8xf32, #tpu.memory_space<vmem>>, %arg5: memref<4x9xf32, #tpu.memory_space<vmem>>, %arg6: memref<4x4xf32, #tpu.memory_space<vmem>>, %arg7: memref<1x4x512xf32, #tpu.memory_space<vmem>>) attributes {dimension_semantics = [#tpu.dimension_semantics<parallel>], iteration_bounds = array<i64: 1>, scalar_prefetch = 0 : i64, scratch_operands = 0 : i64, tpu.core_type = #tpu.core_type<tc>, window_params = [{transform_indices = @transform_0, window_bounds = array<i64: 1, 4, 512>}, {pipeline_mode = #tpu.pipeline_mode<synchronous>, transform_indices = @transform_1, window_bounds = array<i64: 2, 1>}, {pipeline_mode = #tpu.pipeline_mode<synchronous>, transform_indices = @transform_2, window_bounds = array<i64: 3, 8>}, {pipeline_mode = #tpu.pipeline_mode<synchronous>, transform_indices = @transform_3, window_bounds = array<i64: 4, 8>}, {pipeline_mode = #tpu.pipeline_mode<synchronous>, transform_indices = @transform_4, window_bounds = array<i64: 4, 9>}, {pipeline_mode = #tpu.pipeline_mode<synchronous>, transform_indices = @transform_5, window_bounds = array<i64: 4, 4>}, {transform_indices = @transform_6, window_bounds = array<i64: 1, 4, 512>}]} {
    %c0 = arith.constant 0 : index
    %c0_0 = arith.constant 0 : index
    %c0_1 = arith.constant 0 : index
    %0 = vector.load %arg1[%c0, %c0_0, %c0_1] : memref<1x4x512xf32, #tpu.memory_space<vmem>>, vector<1x4x512xf32>
    %1 = vector.shape_cast %0 : vector<1x4x512xf32> to vector<4x512xf32>
    %c0_2 = arith.constant 0 : index
    %c0_3 = arith.constant 0 : index
    %2 = vector.load %arg2[%c0_2, %c0_3] : memref<2x1xf32, #tpu.memory_space<vmem>>, vector<2x1xf32>
    %c0_4 = arith.constant 0 : index
    %c0_5 = arith.constant 0 : index
    %3 = vector.load %arg3[%c0_4, %c0_5] : memref<3x8xf32, #tpu.memory_space<vmem>>, vector<3x8xf32>
    %4 = vector.extract_strided_slice %3 {offsets = [0, 0], sizes = [1, 8], strides = [1, 1]} : vector<3x8xf32> to vector<1x8xf32>
    %5 = vector.extract_strided_slice %3 {offsets = [1, 0], sizes = [1, 8], strides = [1, 1]} : vector<3x8xf32> to vector<1x8xf32>
    %6 = vector.extract_strided_slice %3 {offsets = [2, 0], sizes = [1, 8], strides = [1, 1]} : vector<3x8xf32> to vector<1x8xf32>
    %c0_6 = arith.constant 0 : index
    %c0_7 = arith.constant 0 : index
    %7 = vector.load %arg4[%c0_6, %c0_7] : memref<4x8xf32, #tpu.memory_space<vmem>>, vector<4x8xf32>
    %c0_8 = arith.constant 0 : index
    %c0_9 = arith.constant 0 : index
    %8 = vector.load %arg5[%c0_8, %c0_9] : memref<4x9xf32, #tpu.memory_space<vmem>>, vector<4x9xf32>
    %9 = vector.extract_strided_slice %8 {offsets = [0, 0], sizes = [4, 8], strides = [1, 1]} : vector<4x9xf32> to vector<4x8xf32>
    %10 = vector.extract_strided_slice %8 {offsets = [0, 8], sizes = [4, 1], strides = [1, 1]} : vector<4x9xf32> to vector<4x1xf32>
    %c0_10 = arith.constant 0 : index
    %c0_11 = arith.constant 0 : index
    %11 = vector.load %arg6[%c0_10, %c0_11] : memref<4x4xf32, #tpu.memory_space<vmem>>, vector<4x4xf32>
    %cst = arith.constant dense<0.000000e+00> : vector<4x512xf32>
    %12 = tpu.matmul %11, %1, %cst {dimension_numbers = #tpu.dot_dimension_numbers<[1], [0], [0], [1], [0, 0, 1, 1], [], []>, precision = #tpu.contract_precision<fp32>} : vector<4x4xf32>, vector<4x512xf32>, vector<4x512xf32> -> vector<4x512xf32>
    %13 = vector.extract_strided_slice %1 {offsets = [0, 0], sizes = [4, 256], strides = [1, 1]} : vector<4x512xf32> to vector<4x256xf32>
    %14 = vector.extract_strided_slice %13 {offsets = [0, 0], sizes = [2, 256], strides = [1, 1]} : vector<4x256xf32> to vector<2x256xf32>
    %15 = vector.broadcast %2 : vector<2x1xf32> to vector<2x256xf32>
    %16 = arith.mulf %14, %15 : vector<2x256xf32>
    %cst_12 = arith.constant dense<0.000000e+00> : vector<256xf32>
    %17 = vector.multi_reduction <add>, %16, %cst_12 [0] : vector<2x256xf32> to vector<256xf32>
    %18 = vector.shape_cast %17 : vector<256xf32> to vector<1x256xf32>
    %cst_13 = arith.constant dense<0xFF800000> : vector<1xf32>
    %19 = vector.multi_reduction <maximumf>, %18, %cst_13 [1] : vector<1x256xf32> to vector<1xf32>
    %20 = vector.shape_cast %19 : vector<1xf32> to vector<1x1xf32>
    %21 = vector.broadcast %20 : vector<1x1xf32> to vector<1x256xf32>
    %22 = arith.subf %18, %21 : vector<1x256xf32>
    %23 = math.exp %22 : vector<1x256xf32>
    %cst_14 = arith.constant dense<0.000000e+00> : vector<1xf32>
    %24 = vector.multi_reduction <add>, %23, %cst_14 [1] : vector<1x256xf32> to vector<1xf32>
    %25 = vector.shape_cast %24 : vector<1xf32> to vector<1x1xf32>
    %26 = tpu.reciprocal %25 {approx = true} : vector<1x1xf32> -> vector<1x1xf32>
    %27 = arith.mulf %25, %26 : vector<1x1xf32>
    %cst_15 = arith.constant 2.000000e+00 : f32
    %28 = vector.broadcast %cst_15 : f32 to vector<1x1xf32>
    %29 = arith.subf %28, %27 : vector<1x1xf32>
    %30 = arith.mulf %26, %29 : vector<1x1xf32>
    %31 = vector.broadcast %30 : vector<1x1xf32> to vector<1x256xf32>
    %32 = arith.mulf %23, %31 : vector<1x256xf32>
    %33 = vector.extract_strided_slice %13 {offsets = [0, 0], sizes = [2, 256], strides = [1, 1]} : vector<4x256xf32> to vector<2x256xf32>
    %34 = vector.broadcast %32 : vector<1x256xf32> to vector<2x256xf32>
    %35 = arith.mulf %33, %34 : vector<2x256xf32>
    %cst_16 = arith.constant dense<0.000000e+00> : vector<2xf32>
    %36 = vector.multi_reduction <add>, %35, %cst_16 [1] : vector<2x256xf32> to vector<2xf32>
    %37 = vector.shape_cast %36 : vector<2xf32> to vector<2x1xf32>
    %38 = vector.extract_strided_slice %7 {offsets = [0, 0], sizes = [2, 8], strides = [1, 1]} : vector<4x8xf32> to vector<2x8xf32>
    %39 = vector.broadcast %37 : vector<2x1xf32> to vector<2x8xf32>
    %40 = arith.mulf %38, %39 : vector<2x8xf32>
    %cst_17 = arith.constant dense<0.000000e+00> : vector<8xf32>
    %41 = vector.multi_reduction <add>, %40, %cst_17 [0] : vector<2x8xf32> to vector<8xf32>
    %42 = vector.shape_cast %41 : vector<8xf32> to vector<1x8xf32>
    %43 = arith.addf %4, %42 : vector<1x8xf32>
    %44 = vector.extract_strided_slice %13 {offsets = [2, 0], sizes = [2, 256], strides = [1, 1]} : vector<4x256xf32> to vector<2x256xf32>
    %45 = vector.broadcast %2 : vector<2x1xf32> to vector<2x256xf32>
    %46 = arith.mulf %44, %45 : vector<2x256xf32>
    %cst_18 = arith.constant dense<0.000000e+00> : vector<256xf32>
    %47 = vector.multi_reduction <add>, %46, %cst_18 [0] : vector<2x256xf32> to vector<256xf32>
    %48 = vector.shape_cast %47 : vector<256xf32> to vector<1x256xf32>
    %cst_19 = arith.constant dense<0xFF800000> : vector<1xf32>
    %49 = vector.multi_reduction <maximumf>, %48, %cst_19 [1] : vector<1x256xf32> to vector<1xf32>
    %50 = vector.shape_cast %49 : vector<1xf32> to vector<1x1xf32>
    %51 = vector.broadcast %50 : vector<1x1xf32> to vector<1x256xf32>
    %52 = arith.subf %48, %51 : vector<1x256xf32>
    %53 = math.exp %52 : vector<1x256xf32>
    %cst_20 = arith.constant dense<0.000000e+00> : vector<1xf32>
    %54 = vector.multi_reduction <add>, %53, %cst_20 [1] : vector<1x256xf32> to vector<1xf32>
    %55 = vector.shape_cast %54 : vector<1xf32> to vector<1x1xf32>
    %56 = tpu.reciprocal %55 {approx = true} : vector<1x1xf32> -> vector<1x1xf32>
    %57 = arith.mulf %55, %56 : vector<1x1xf32>
    %cst_21 = arith.constant 2.000000e+00 : f32
    %58 = vector.broadcast %cst_21 : f32 to vector<1x1xf32>
    %59 = arith.subf %58, %57 : vector<1x1xf32>
    %60 = arith.mulf %56, %59 : vector<1x1xf32>
    %61 = vector.broadcast %60 : vector<1x1xf32> to vector<1x256xf32>
    %62 = arith.mulf %53, %61 : vector<1x256xf32>
    %63 = vector.extract_strided_slice %13 {offsets = [2, 0], sizes = [2, 256], strides = [1, 1]} : vector<4x256xf32> to vector<2x256xf32>
    %64 = vector.broadcast %62 : vector<1x256xf32> to vector<2x256xf32>
    %65 = arith.mulf %63, %64 : vector<2x256xf32>
    %cst_22 = arith.constant dense<0.000000e+00> : vector<2xf32>
    %66 = vector.multi_reduction <add>, %65, %cst_22 [1] : vector<2x256xf32> to vector<2xf32>
    %67 = vector.shape_cast %66 : vector<2xf32> to vector<2x1xf32>
    %68 = vector.extract_strided_slice %7 {offsets = [2, 0], sizes = [2, 8], strides = [1, 1]} : vector<4x8xf32> to vector<2x8xf32>
    %69 = vector.broadcast %67 : vector<2x1xf32> to vector<2x8xf32>
    %70 = arith.mulf %68, %69 : vector<2x8xf32>
    %cst_23 = arith.constant dense<0.000000e+00> : vector<8xf32>
    %71 = vector.multi_reduction <add>, %70, %cst_23 [0] : vector<2x8xf32> to vector<8xf32>
    %72 = vector.shape_cast %71 : vector<8xf32> to vector<1x8xf32>
    %73 = arith.addf %43, %72 : vector<1x8xf32>
    %74 = vector.shape_cast %73 : vector<1x8xf32> to vector<1x1x8xf32>
    %cst_24 = arith.constant dense<0.000000e+00> : vector<1xf32>
    %75 = vector.multi_reduction <add>, %74, %cst_24 [1, 2] : vector<1x1x8xf32> to vector<1xf32>
    %76 = vector.shape_cast %75 : vector<1xf32> to vector<1x1x1xf32>
    %77 = vector.extract %76[0, 0, 0] : f32 from vector<1x1x1xf32>
    %78 = vector.broadcast %77 : f32 to vector<1x1xf32>
    %cst_25 = arith.constant 8.000000e+00 : f32
    %79 = vector.broadcast %cst_25 : f32 to vector<1x1xf32>
    %80 = arith.divf %78, %79 : vector<1x1xf32>
    %81 = vector.broadcast %80 : vector<1x1xf32> to vector<1x8xf32>
    %82 = arith.subf %73, %81 : vector<1x8xf32>
    %83 = arith.mulf %82, %82 : vector<1x8xf32>
    %84 = vector.shape_cast %83 : vector<1x8xf32> to vector<1x1x8xf32>
    %cst_26 = arith.constant dense<0.000000e+00> : vector<1xf32>
    %85 = vector.multi_reduction <add>, %84, %cst_26 [1, 2] : vector<1x1x8xf32> to vector<1xf32>
    %86 = vector.shape_cast %85 : vector<1xf32> to vector<1x1x1xf32>
    %87 = vector.extract %86[0, 0, 0] : f32 from vector<1x1x1xf32>
    %88 = vector.broadcast %87 : f32 to vector<1x1xf32>
    %cst_27 = arith.constant 8.000000e+00 : f32
    %89 = vector.broadcast %cst_27 : f32 to vector<1x1xf32>
    %90 = arith.divf %88, %89 : vector<1x1xf32>
    %91 = vector.broadcast %80 : vector<1x1xf32> to vector<1x8xf32>
    %92 = arith.subf %73, %91 : vector<1x8xf32>
    %cst_28 = arith.constant 9.99999974E-6 : f32
    %93 = vector.broadcast %cst_28 : f32 to vector<1x1xf32>
    %94 = arith.addf %90, %93 : vector<1x1xf32>
    %95 = math.rsqrt %94 : vector<1x1xf32>
    %96 = vector.broadcast %95 : vector<1x1xf32> to vector<1x8xf32>
    %97 = arith.mulf %92, %96 : vector<1x8xf32>
    %98 = arith.mulf %97, %5 : vector<1x8xf32>
    %99 = arith.addf %98, %6 : vector<1x8xf32>
    %cst_29 = arith.constant 0.000000e+00 : f32
    %100 = vector.broadcast %cst_29 : f32 to vector<1x8xf32>
    %101 = arith.maximumf %99, %100 : vector<1x8xf32>
    %102 = vector.broadcast %101 : vector<1x8xf32> to vector<4x8xf32>
    %103 = arith.mulf %9, %102 : vector<4x8xf32>
    %cst_30 = arith.constant dense<0.000000e+00> : vector<4xf32>
    %104 = vector.multi_reduction <add>, %103, %cst_30 [1] : vector<4x8xf32> to vector<4xf32>
    %105 = vector.shape_cast %104 : vector<4xf32> to vector<4x1xf32>
    %106 = arith.addf %105, %10 : vector<4x1xf32>
    %107 = vector.extract_strided_slice %12 {offsets = [0, 0], sizes = [4, 256], strides = [1, 1]} : vector<4x512xf32> to vector<4x256xf32>
    %108 = vector.broadcast %106 : vector<4x1xf32> to vector<4x256xf32>
    %109 = arith.addf %107, %108 : vector<4x256xf32>
    %110 = vector.shape_cast %109 : vector<4x256xf32> to vector<1x4x256xf32>
    %cst_31 = arith.constant dense<0.000000e+00> : vector<1xf32>
    %111 = vector.multi_reduction <add>, %110, %cst_31 [1, 2] : vector<1x4x256xf32> to vector<1xf32>
    %112 = vector.shape_cast %111 : vector<1xf32> to vector<1x1x1xf32>
    %113 = vector.extract %112[0, 0, 0] : f32 from vector<1x1x1xf32>
    %114 = vector.broadcast %113 : f32 to vector<1x1xf32>
    %115 = arith.mulf %109, %109 : vector<4x256xf32>
    %116 = vector.shape_cast %115 : vector<4x256xf32> to vector<1x4x256xf32>
    %cst_32 = arith.constant dense<0.000000e+00> : vector<1xf32>
    %117 = vector.multi_reduction <add>, %116, %cst_32 [1, 2] : vector<1x4x256xf32> to vector<1xf32>
    %118 = vector.shape_cast %117 : vector<1xf32> to vector<1x1x1xf32>
    %119 = vector.extract %118[0, 0, 0] : f32 from vector<1x1x1xf32>
    %120 = vector.broadcast %119 : f32 to vector<1x1xf32>
    %cst_33 = arith.constant 9.765625E-4 : f32
    %121 = vector.broadcast %cst_33 : f32 to vector<1x1xf32>
    %122 = arith.mulf %114, %121 : vector<1x1xf32>
    %cst_34 = arith.constant 9.765625E-4 : f32
    %123 = vector.broadcast %cst_34 : f32 to vector<1x1xf32>
    %124 = arith.mulf %120, %123 : vector<1x1xf32>
    %125 = arith.mulf %122, %122 : vector<1x1xf32>
    %126 = arith.subf %124, %125 : vector<1x1xf32>
    %cst_35 = arith.constant 0.000000e+00 : f32
    %127 = vector.broadcast %cst_35 : f32 to vector<1x1xf32>
    %128 = arith.maximumf %126, %127 : vector<1x1xf32>
    %129 = vector.broadcast %122 : vector<1x1xf32> to vector<4x256xf32>
    %130 = arith.subf %109, %129 : vector<4x256xf32>
    %cst_36 = arith.constant 9.99999974E-6 : f32
    %131 = vector.broadcast %cst_36 : f32 to vector<1x1xf32>
    %132 = arith.addf %128, %131 : vector<1x1xf32>
    %133 = math.rsqrt %132 : vector<1x1xf32>
    %134 = vector.broadcast %133 : vector<1x1xf32> to vector<4x256xf32>
    %135 = arith.mulf %130, %134 : vector<4x256xf32>
    %cst_37 = arith.constant 0.000000e+00 : f32
    %136 = vector.broadcast %cst_37 : f32 to vector<4x256xf32>
    %137 = arith.maximumf %135, %136 : vector<4x256xf32>
    %c0_38 = arith.constant 0 : index
    %c0_39 = arith.constant 0 : index
    %c0_40 = arith.constant 0 : index
    %138 = vector.load %arg7[%c0_38, %c0_39, %c0_40] : memref<1x4x512xf32, #tpu.memory_space<vmem>>, vector<1x4x256xf32>
    %139 = vector.shape_cast %138 : vector<1x4x256xf32> to vector<4x256xf32>
    %140 = vector.shape_cast %137 : vector<4x256xf32> to vector<1x4x256xf32>
    tpu.vector_store %arg7[%c0_38, %c0_39, %c0_40], %140 {strides = array<i32>} : memref<1x4x512xf32, #tpu.memory_space<vmem>>, vector<1x4x256xf32>,
    %141 = vector.extract_strided_slice %1 {offsets = [0, 256], sizes = [4, 256], strides = [1, 1]} : vector<4x512xf32> to vector<4x256xf32>
    %142 = vector.extract_strided_slice %141 {offsets = [0, 0], sizes = [2, 256], strides = [1, 1]} : vector<4x256xf32> to vector<2x256xf32>
    %143 = vector.broadcast %2 : vector<2x1xf32> to vector<2x256xf32>
    %144 = arith.mulf %142, %143 : vector<2x256xf32>
    %cst_41 = arith.constant dense<0.000000e+00> : vector<256xf32>
    %145 = vector.multi_reduction <add>, %144, %cst_41 [0] : vector<2x256xf32> to vector<256xf32>
    %146 = vector.shape_cast %145 : vector<256xf32> to vector<1x256xf32>
    %cst_42 = arith.constant dense<0xFF800000> : vector<1xf32>
    %147 = vector.multi_reduction <maximumf>, %146, %cst_42 [1] : vector<1x256xf32> to vector<1xf32>
    %148 = vector.shape_cast %147 : vector<1xf32> to vector<1x1xf32>
    %149 = vector.broadcast %148 : vector<1x1xf32> to vector<1x256xf32>
    %150 = arith.subf %146, %149 : vector<1x256xf32>
    %151 = math.exp %150 : vector<1x256xf32>
    %cst_43 = arith.constant dense<0.000000e+00> : vector<1xf32>
    %152 = vector.multi_reduction <add>, %151, %cst_43 [1] : vector<1x256xf32> to vector<1xf32>
    %153 = vector.shape_cast %152 : vector<1xf32> to vector<1x1xf32>
    %154 = tpu.reciprocal %153 {approx = true} : vector<1x1xf32> -> vector<1x1xf32>
    %155 = arith.mulf %153, %154 : vector<1x1xf32>
    %cst_44 = arith.constant 2.000000e+00 : f32
    %156 = vector.broadcast %cst_44 : f32 to vector<1x1xf32>
    %157 = arith.subf %156, %155 : vector<1x1xf32>
    %158 = arith.mulf %154, %157 : vector<1x1xf32>
    %159 = vector.broadcast %158 : vector<1x1xf32> to vector<1x256xf32>
    %160 = arith.mulf %151, %159 : vector<1x256xf32>
    %161 = vector.extract_strided_slice %141 {offsets = [0, 0], sizes = [2, 256], strides = [1, 1]} : vector<4x256xf32> to vector<2x256xf32>
    %162 = vector.broadcast %160 : vector<1x256xf32> to vector<2x256xf32>
    %163 = arith.mulf %161, %162 : vector<2x256xf32>
    %cst_45 = arith.constant dense<0.000000e+00> : vector<2xf32>
    %164 = vector.multi_reduction <add>, %163, %cst_45 [1] : vector<2x256xf32> to vector<2xf32>
    %165 = vector.shape_cast %164 : vector<2xf32> to vector<2x1xf32>
    %166 = vector.extract_strided_slice %7 {offsets = [0, 0], sizes = [2, 8], strides = [1, 1]} : vector<4x8xf32> to vector<2x8xf32>
    %167 = vector.broadcast %165 : vector<2x1xf32> to vector<2x8xf32>
    %168 = arith.mulf %166, %167 : vector<2x8xf32>
    %cst_46 = arith.constant dense<0.000000e+00> : vector<8xf32>
    %169 = vector.multi_reduction <add>, %168, %cst_46 [0] : vector<2x8xf32> to vector<8xf32>
    %170 = vector.shape_cast %169 : vector<8xf32> to vector<1x8xf32>
    %171 = arith.addf %4, %170 : vector<1x8xf32>
    %172 = vector.extract_strided_slice %141 {offsets = [2, 0], sizes = [2, 256], strides = [1, 1]} : vector<4x256xf32> to vector<2x256xf32>
    %173 = vector.broadcast %2 : vector<2x1xf32> to vector<2x256xf32>
    %174 = arith.mulf %172, %173 : vector<2x256xf32>
    %cst_47 = arith.constant dense<0.000000e+00> : vector<256xf32>
    %175 = vector.multi_reduction <add>, %174, %cst_47 [0] : vector<2x256xf32> to vector<256xf32>
    %176 = vector.shape_cast %175 : vector<256xf32> to vector<1x256xf32>
    %cst_48 = arith.constant dense<0xFF800000> : vector<1xf32>
    %177 = vector.multi_reduction <maximumf>, %176, %cst_48 [1] : vector<1x256xf32> to vector<1xf32>
    %178 = vector.shape_cast %177 : vector<1xf32> to vector<1x1xf32>
    %179 = vector.broadcast %178 : vector<1x1xf32> to vector<1x256xf32>
    %180 = arith.subf %176, %179 : vector<1x256xf32>
    %181 = math.exp %180 : vector<1x256xf32>
    %cst_49 = arith.constant dense<0.000000e+00> : vector<1xf32>
    %182 = vector.multi_reduction <add>, %181, %cst_49 [1] : vector<1x256xf32> to vector<1xf32>
    %183 = vector.shape_cast %182 : vector<1xf32> to vector<1x1xf32>
    %184 = tpu.reciprocal %183 {approx = true} : vector<1x1xf32> -> vector<1x1xf32>
    %185 = arith.mulf %183, %184 : vector<1x1xf32>
    %cst_50 = arith.constant 2.000000e+00 : f32
    %186 = vector.broadcast %cst_50 : f32 to vector<1x1xf32>
    %187 = arith.subf %186, %185 : vector<1x1xf32>
    %188 = arith.mulf %184, %187 : vector<1x1xf32>
    %189 = vector.broadcast %188 : vector<1x1xf32> to vector<1x256xf32>
    %190 = arith.mulf %181, %189 : vector<1x256xf32>
    %191 = vector.extract_strided_slice %141 {offsets = [2, 0], sizes = [2, 256], strides = [1, 1]} : vector<4x256xf32> to vector<2x256xf32>
    %192 = vector.broadcast %190 : vector<1x256xf32> to vector<2x256xf32>
    %193 = arith.mulf %191, %192 : vector<2x256xf32>
    %cst_51 = arith.constant dense<0.000000e+00> : vector<2xf32>
    %194 = vector.multi_reduction <add>, %193, %cst_51 [1] : vector<2x256xf32> to vector<2xf32>
    %195 = vector.shape_cast %194 : vector<2xf32> to vector<2x1xf32>
    %196 = vector.extract_strided_slice %7 {offsets = [2, 0], sizes = [2, 8], strides = [1, 1]} : vector<4x8xf32> to vector<2x8xf32>
    %197 = vector.broadcast %195 : vector<2x1xf32> to vector<2x8xf32>
    %198 = arith.mulf %196, %197 : vector<2x8xf32>
    %cst_52 = arith.constant dense<0.000000e+00> : vector<8xf32>
    %199 = vector.multi_reduction <add>, %198, %cst_52 [0] : vector<2x8xf32> to vector<8xf32>
    %200 = vector.shape_cast %199 : vector<8xf32> to vector<1x8xf32>
    %201 = arith.addf %171, %200 : vector<1x8xf32>
    %202 = vector.shape_cast %201 : vector<1x8xf32> to vector<1x1x8xf32>
    %cst_53 = arith.constant dense<0.000000e+00> : vector<1xf32>
    %203 = vector.multi_reduction <add>, %202, %cst_53 [1, 2] : vector<1x1x8xf32> to vector<1xf32>
    %204 = vector.shape_cast %203 : vector<1xf32> to vector<1x1x1xf32>
    %205 = vector.extract %204[0, 0, 0] : f32 from vector<1x1x1xf32>
    %206 = vector.broadcast %205 : f32 to vector<1x1xf32>
    %cst_54 = arith.constant 8.000000e+00 : f32
    %207 = vector.broadcast %cst_54 : f32 to vector<1x1xf32>
    %208 = arith.divf %206, %207 : vector<1x1xf32>
    %209 = vector.broadcast %208 : vector<1x1xf32> to vector<1x8xf32>
    %210 = arith.subf %201, %209 : vector<1x8xf32>
    %211 = arith.mulf %210, %210 : vector<1x8xf32>
    %212 = vector.shape_cast %211 : vector<1x8xf32> to vector<1x1x8xf32>
    %cst_55 = arith.constant dense<0.000000e+00> : vector<1xf32>
    %213 = vector.multi_reduction <add>, %212, %cst_55 [1, 2] : vector<1x1x8xf32> to vector<1xf32>
    %214 = vector.shape_cast %213 : vector<1xf32> to vector<1x1x1xf32>
    %215 = vector.extract %214[0, 0, 0] : f32 from vector<1x1x1xf32>
    %216 = vector.broadcast %215 : f32 to vector<1x1xf32>
    %cst_56 = arith.constant 8.000000e+00 : f32
    %217 = vector.broadcast %cst_56 : f32 to vector<1x1xf32>
    %218 = arith.divf %216, %217 : vector<1x1xf32>
    %219 = vector.broadcast %208 : vector<1x1xf32> to vector<1x8xf32>
    %220 = arith.subf %201, %219 : vector<1x8xf32>
    %cst_57 = arith.constant 9.99999974E-6 : f32
    %221 = vector.broadcast %cst_57 : f32 to vector<1x1xf32>
    %222 = arith.addf %218, %221 : vector<1x1xf32>
    %223 = math.rsqrt %222 : vector<1x1xf32>
    %224 = vector.broadcast %223 : vector<1x1xf32> to vector<1x8xf32>
    %225 = arith.mulf %220, %224 : vector<1x8xf32>
    %226 = arith.mulf %225, %5 : vector<1x8xf32>
    %227 = arith.addf %226, %6 : vector<1x8xf32>
    %cst_58 = arith.constant 0.000000e+00 : f32
    %228 = vector.broadcast %cst_58 : f32 to vector<1x8xf32>
    %229 = arith.maximumf %227, %228 : vector<1x8xf32>
    %230 = vector.broadcast %229 : vector<1x8xf32> to vector<4x8xf32>
    %231 = arith.mulf %9, %230 : vector<4x8xf32>
    %cst_59 = arith.constant dense<0.000000e+00> : vector<4xf32>
    %232 = vector.multi_reduction <add>, %231, %cst_59 [1] : vector<4x8xf32> to vector<4xf32>
    %233 = vector.shape_cast %232 : vector<4xf32> to vector<4x1xf32>
    %234 = arith.addf %233, %10 : vector<4x1xf32>
    %235 = vector.extract_strided_slice %12 {offsets = [0, 256], sizes = [4, 256], strides = [1, 1]} : vector<4x512xf32> to vector<4x256xf32>
    %236 = vector.broadcast %234 : vector<4x1xf32> to vector<4x256xf32>
    %237 = arith.addf %235, %236 : vector<4x256xf32>
    %238 = vector.shape_cast %237 : vector<4x256xf32> to vector<1x4x256xf32>
    %cst_60 = arith.constant dense<0.000000e+00> : vector<1xf32>
    %239 = vector.multi_reduction <add>, %238, %cst_60 [1, 2] : vector<1x4x256xf32> to vector<1xf32>
    %240 = vector.shape_cast %239 : vector<1xf32> to vector<1x1x1xf32>
    %241 = vector.extract %240[0, 0, 0] : f32 from vector<1x1x1xf32>
    %242 = vector.broadcast %241 : f32 to vector<1x1xf32>
    %243 = arith.mulf %237, %237 : vector<4x256xf32>
    %244 = vector.shape_cast %243 : vector<4x256xf32> to vector<1x4x256xf32>
    %cst_61 = arith.constant dense<0.000000e+00> : vector<1xf32>
    %245 = vector.multi_reduction <add>, %244, %cst_61 [1, 2] : vector<1x4x256xf32> to vector<1xf32>
    %246 = vector.shape_cast %245 : vector<1xf32> to vector<1x1x1xf32>
    %247 = vector.extract %246[0, 0, 0] : f32 from vector<1x1x1xf32>
    %248 = vector.broadcast %247 : f32 to vector<1x1xf32>
    %cst_62 = arith.constant 9.765625E-4 : f32
    %249 = vector.broadcast %cst_62 : f32 to vector<1x1xf32>
    %250 = arith.mulf %242, %249 : vector<1x1xf32>
    %cst_63 = arith.constant 9.765625E-4 : f32
    %251 = vector.broadcast %cst_63 : f32 to vector<1x1xf32>
    %252 = arith.mulf %248, %251 : vector<1x1xf32>
    %253 = arith.mulf %250, %250 : vector<1x1xf32>
    %254 = arith.subf %252, %253 : vector<1x1xf32>
    %cst_64 = arith.constant 0.000000e+00 : f32
    %255 = vector.broadcast %cst_64 : f32 to vector<1x1xf32>
    %256 = arith.maximumf %254, %255 : vector<1x1xf32>
    %257 = vector.broadcast %250 : vector<1x1xf32> to vector<4x256xf32>
    %258 = arith.subf %237, %257 : vector<4x256xf32>
    %cst_65 = arith.constant 9.99999974E-6 : f32
    %259 = vector.broadcast %cst_65 : f32 to vector<1x1xf32>
    %260 = arith.addf %256, %259 : vector<1x1xf32>
    %261 = math.rsqrt %260 : vector<1x1xf32>
    %262 = vector.broadcast %261 : vector<1x1xf32> to vector<4x256xf32>
    %263 = arith.mulf %258, %262 : vector<4x256xf32>
    %cst_66 = arith.constant 0.000000e+00 : f32
    %264 = vector.broadcast %cst_66 : f32 to vector<4x256xf32>
    %265 = arith.maximumf %263, %264 : vector<4x256xf32>
    %c0_67 = arith.constant 0 : index
    %c0_68 = arith.constant 0 : index
    %c256 = arith.constant 256 : index
    %266 = vector.load %arg7[%c0_67, %c0_68, %c256] : memref<1x4x512xf32, #tpu.memory_space<vmem>>, vector<1x4x256xf32>
    %267 = vector.shape_cast %266 : vector<1x4x256xf32> to vector<4x256xf32>
    %268 = vector.shape_cast %265 : vector<4x256xf32> to vector<1x4x256xf32>
    tpu.vector_store %arg7[%c0_67, %c0_68, %c256], %268 {strides = array<i32>} : memref<1x4x512xf32, #tpu.memory_space<vmem>>, vector<1x4x256xf32>,
    return
  }
  func.func @transform_0(%arg0: i32) -> (i32, i32, i32) {
    %c0_i32 = arith.constant 0 : i32
    %c0_i32_0 = arith.constant 0 : i32
    %c0_i32_1 = arith.constant 0 : i32
    return %arg0, %c0_i32, %c0_i32_0 : i32, i32, i32
  }
  func.func @transform_1(%arg0: i32) -> (i32, i32) {
    %c0_i32 = arith.constant 0 : i32
    %c0_i32_0 = arith.constant 0 : i32
    %c0_i32_1 = arith.constant 0 : i32
    return %c0_i32, %c0_i32_0 : i32, i32
  }
  func.func @transform_2(%arg0: i32) -> (i32, i32) {
    %c0_i32 = arith.constant 0 : i32
    %c0_i32_0 = arith.constant 0 : i32
    %c0_i32_1 = arith.constant 0 : i32
    return %c0_i32, %c0_i32_0 : i32, i32
  }
  func.func @transform_3(%arg0: i32) -> (i32, i32) {
    %c0_i32 = arith.constant 0 : i32
    %c0_i32_0 = arith.constant 0 : i32
    %c0_i32_1 = arith.constant 0 : i32
    return %c0_i32, %c0_i32_0 : i32, i32
  }
  func.func @transform_4(%arg0: i32) -> (i32, i32) {
    %c0_i32 = arith.constant 0 : i32
    %c0_i32_0 = arith.constant 0 : i32
    %c0_i32_1 = arith.constant 0 : i32
    return %c0_i32, %c0_i32_0 : i32, i32
  }
  func.func @transform_5(%arg0: i32) -> (i32, i32) {
    %c0_i32 = arith.constant 0 : i32
    %c0_i32_0 = arith.constant 0 : i32
    %c0_i32_1 = arith.constant 0 : i32
    return %c0_i32, %c0_i32_0 : i32, i32
  }
  func.func @transform_6(%arg0: i32) -> (i32, i32, i32) {
    %c0_i32 = arith.constant 0 : i32
    %c0_i32_0 = arith.constant 0 : i32
    %c0_i32_1 = arith.constant 0 : i32
    return %arg0, %c0_i32, %c0_i32_0 : i32, i32, i32
  }
}

module attributes {stable_mosaic.version = 11 : i64} {
  func.func @_mga_kernel(%arg0: i32, %arg1: memref<1x4x512xf32, #tpu.memory_space<vmem>>, %arg2: memref<2x1xf32, #tpu.memory_space<vmem>>, %arg3: memref<3x8xf32, #tpu.memory_space<vmem>>, %arg4: memref<4x8xf32, #tpu.memory_space<vmem>>, %arg5: memref<4x9xf32, #tpu.memory_space<vmem>>, %arg6: memref<4x4xf32, #tpu.memory_space<vmem>>, %arg7: memref<1x4x512xf32, #tpu.memory_space<vmem>>) attributes {dimension_semantics = [#tpu.dimension_semantics<parallel>], iteration_bounds = array<i64: 1>, scalar_prefetch = 0 : i64, scratch_operands = 0 : i64, tpu.core_type = #tpu.core_type<tc>, window_params = [{transform_indices = @transform_0, window_bounds = array<i64: 1, 4, 512>}, {pipeline_mode = #tpu.pipeline_mode<synchronous>, transform_indices = @transform_1, window_bounds = array<i64: 2, 1>}, {pipeline_mode = #tpu.pipeline_mode<synchronous>, transform_indices = @transform_2, window_bounds = array<i64: 3, 8>}, {pipeline_mode = #tpu.pipeline_mode<synchronous>, transform_indices = @transform_3, window_bounds = array<i64: 4, 8>}, {pipeline_mode = #tpu.pipeline_mode<synchronous>, transform_indices = @transform_4, window_bounds = array<i64: 4, 9>}, {pipeline_mode = #tpu.pipeline_mode<synchronous>, transform_indices = @transform_5, window_bounds = array<i64: 4, 4>}, {transform_indices = @transform_6, window_bounds = array<i64: 1, 4, 512>}]} {
    %c0 = arith.constant 0 : index
    %c0_0 = arith.constant 0 : index
    %c0_1 = arith.constant 0 : index
    %0 = vector.load %arg1[%c0, %c0_0, %c0_1] : memref<1x4x512xf32, #tpu.memory_space<vmem>>, vector<1x4x512xf32>
    %1 = vector.shape_cast %0 : vector<1x4x512xf32> to vector<4x512xf32>
    %c0_2 = arith.constant 0 : index
    %c0_3 = arith.constant 0 : index
    %2 = vector.load %arg2[%c0_2, %c0_3] : memref<2x1xf32, #tpu.memory_space<vmem>>, vector<2x1xf32>
    %c0_4 = arith.constant 0 : index
    %c0_5 = arith.constant 0 : index
    %3 = vector.load %arg3[%c0_4, %c0_5] : memref<3x8xf32, #tpu.memory_space<vmem>>, vector<3x8xf32>
    %4 = vector.extract_strided_slice %3 {offsets = [0, 0], sizes = [1, 8], strides = [1, 1]} : vector<3x8xf32> to vector<1x8xf32>
    %5 = vector.extract_strided_slice %3 {offsets = [1, 0], sizes = [1, 8], strides = [1, 1]} : vector<3x8xf32> to vector<1x8xf32>
    %6 = vector.extract_strided_slice %3 {offsets = [2, 0], sizes = [1, 8], strides = [1, 1]} : vector<3x8xf32> to vector<1x8xf32>
    %c0_6 = arith.constant 0 : index
    %c0_7 = arith.constant 0 : index
    %7 = vector.load %arg4[%c0_6, %c0_7] : memref<4x8xf32, #tpu.memory_space<vmem>>, vector<4x8xf32>
    %c0_8 = arith.constant 0 : index
    %c0_9 = arith.constant 0 : index
    %8 = vector.load %arg5[%c0_8, %c0_9] : memref<4x9xf32, #tpu.memory_space<vmem>>, vector<4x9xf32>
    %9 = vector.extract_strided_slice %8 {offsets = [0, 0], sizes = [4, 8], strides = [1, 1]} : vector<4x9xf32> to vector<4x8xf32>
    %10 = vector.extract_strided_slice %8 {offsets = [0, 8], sizes = [4, 1], strides = [1, 1]} : vector<4x9xf32> to vector<4x1xf32>
    %c0_10 = arith.constant 0 : index
    %c0_11 = arith.constant 0 : index
    %11 = vector.load %arg6[%c0_10, %c0_11] : memref<4x4xf32, #tpu.memory_space<vmem>>, vector<4x4xf32>
    %cst = arith.constant dense<0.000000e+00> : vector<4x512xf32>
    %12 = tpu.matmul %11, %1, %cst {dimension_numbers = #tpu.dot_dimension_numbers<[1], [0], [0], [1], [0, 0, 1, 1], [], []>, precision = #tpu.contract_precision<fp32>} : vector<4x4xf32>, vector<4x512xf32>, vector<4x512xf32> -> vector<4x512xf32>
    %13 = vector.extract_strided_slice %1 {offsets = [0, 0], sizes = [4, 256], strides = [1, 1]} : vector<4x512xf32> to vector<4x256xf32>
    %14 = vector.extract_strided_slice %13 {offsets = [0, 0], sizes = [2, 256], strides = [1, 1]} : vector<4x256xf32> to vector<2x256xf32>
    %15 = vector.broadcast %2 : vector<2x1xf32> to vector<2x256xf32>
    %16 = arith.mulf %14, %15 : vector<2x256xf32>
    %cst_12 = arith.constant dense<0.000000e+00> : vector<256xf32>
    %17 = vector.multi_reduction <add>, %16, %cst_12 [0] : vector<2x256xf32> to vector<256xf32>
    %18 = vector.shape_cast %17 : vector<256xf32> to vector<1x256xf32>
    %cst_13 = arith.constant dense<0xFF800000> : vector<1xf32>
    %19 = vector.multi_reduction <maximumf>, %18, %cst_13 [1] : vector<1x256xf32> to vector<1xf32>
    %20 = vector.shape_cast %19 : vector<1xf32> to vector<1x1xf32>
    %21 = vector.broadcast %20 : vector<1x1xf32> to vector<1x256xf32>
    %22 = arith.subf %18, %21 : vector<1x256xf32>
    %23 = math.exp %22 : vector<1x256xf32>
    %cst_14 = arith.constant dense<0.000000e+00> : vector<1xf32>
    %24 = vector.multi_reduction <add>, %23, %cst_14 [1] : vector<1x256xf32> to vector<1xf32>
    %25 = vector.shape_cast %24 : vector<1xf32> to vector<1x1xf32>
    %26 = tpu.reciprocal %25 {approx = true} : vector<1x1xf32> -> vector<1x1xf32>
    %27 = arith.mulf %25, %26 : vector<1x1xf32>
    %cst_15 = arith.constant 2.000000e+00 : f32
    %28 = vector.broadcast %cst_15 : f32 to vector<1x1xf32>
    %29 = arith.subf %28, %27 : vector<1x1xf32>
    %30 = arith.mulf %26, %29 : vector<1x1xf32>
    %31 = vector.broadcast %30 : vector<1x1xf32> to vector<1x256xf32>
    %32 = arith.mulf %23, %31 : vector<1x256xf32>
    %33 = vector.extract_strided_slice %13 {offsets = [0, 0], sizes = [2, 256], strides = [1, 1]} : vector<4x256xf32> to vector<2x256xf32>
    %34 = vector.broadcast %32 : vector<1x256xf32> to vector<2x256xf32>
    %35 = arith.mulf %33, %34 : vector<2x256xf32>
    %cst_16 = arith.constant dense<0.000000e+00> : vector<2xf32>
    %36 = vector.multi_reduction <add>, %35, %cst_16 [1] : vector<2x256xf32> to vector<2xf32>
    %37 = vector.shape_cast %36 : vector<2xf32> to vector<2x1xf32>
    %38 = vector.extract_strided_slice %7 {offsets = [0, 0], sizes = [2, 8], strides = [1, 1]} : vector<4x8xf32> to vector<2x8xf32>
    %39 = vector.broadcast %37 : vector<2x1xf32> to vector<2x8xf32>
    %40 = arith.mulf %38, %39 : vector<2x8xf32>
    %cst_17 = arith.constant dense<0.000000e+00> : vector<8xf32>
    %41 = vector.multi_reduction <add>, %40, %cst_17 [0] : vector<2x8xf32> to vector<8xf32>
    %42 = vector.shape_cast %41 : vector<8xf32> to vector<1x8xf32>
    %43 = arith.addf %4, %42 : vector<1x8xf32>
    %44 = vector.extract_strided_slice %13 {offsets = [2, 0], sizes = [2, 256], strides = [1, 1]} : vector<4x256xf32> to vector<2x256xf32>
    %45 = vector.broadcast %2 : vector<2x1xf32> to vector<2x256xf32>
    %46 = arith.mulf %44, %45 : vector<2x256xf32>
    %cst_18 = arith.constant dense<0.000000e+00> : vector<256xf32>
    %47 = vector.multi_reduction <add>, %46, %cst_18 [0] : vector<2x256xf32> to vector<256xf32>
    %48 = vector.shape_cast %47 : vector<256xf32> to vector<1x256xf32>
    %cst_19 = arith.constant dense<0xFF800000> : vector<1xf32>
    %49 = vector.multi_reduction <maximumf>, %48, %cst_19 [1] : vector<1x256xf32> to vector<1xf32>
    %50 = vector.shape_cast %49 : vector<1xf32> to vector<1x1xf32>
    %51 = vector.broadcast %50 : vector<1x1xf32> to vector<1x256xf32>
    %52 = arith.subf %48, %51 : vector<1x256xf32>
    %53 = math.exp %52 : vector<1x256xf32>
    %cst_20 = arith.constant dense<0.000000e+00> : vector<1xf32>
    %54 = vector.multi_reduction <add>, %53, %cst_20 [1] : vector<1x256xf32> to vector<1xf32>
    %55 = vector.shape_cast %54 : vector<1xf32> to vector<1x1xf32>
    %56 = tpu.reciprocal %55 {approx = true} : vector<1x1xf32> -> vector<1x1xf32>
    %57 = arith.mulf %55, %56 : vector<1x1xf32>
    %cst_21 = arith.constant 2.000000e+00 : f32
    %58 = vector.broadcast %cst_21 : f32 to vector<1x1xf32>
    %59 = arith.subf %58, %57 : vector<1x1xf32>
    %60 = arith.mulf %56, %59 : vector<1x1xf32>
    %61 = vector.broadcast %60 : vector<1x1xf32> to vector<1x256xf32>
    %62 = arith.mulf %53, %61 : vector<1x256xf32>
    %63 = vector.extract_strided_slice %13 {offsets = [2, 0], sizes = [2, 256], strides = [1, 1]} : vector<4x256xf32> to vector<2x256xf32>
    %64 = vector.broadcast %62 : vector<1x256xf32> to vector<2x256xf32>
    %65 = arith.mulf %63, %64 : vector<2x256xf32>
    %cst_22 = arith.constant dense<0.000000e+00> : vector<2xf32>
    %66 = vector.multi_reduction <add>, %65, %cst_22 [1] : vector<2x256xf32> to vector<2xf32>
    %67 = vector.shape_cast %66 : vector<2xf32> to vector<2x1xf32>
    %68 = vector.extract_strided_slice %7 {offsets = [2, 0], sizes = [2, 8], strides = [1, 1]} : vector<4x8xf32> to vector<2x8xf32>
    %69 = vector.broadcast %67 : vector<2x1xf32> to vector<2x8xf32>
    %70 = arith.mulf %68, %69 : vector<2x8xf32>
    %cst_23 = arith.constant dense<0.000000e+00> : vector<8xf32>
    %71 = vector.multi_reduction <add>, %70, %cst_23 [0] : vector<2x8xf32> to vector<8xf32>
    %72 = vector.shape_cast %71 : vector<8xf32> to vector<1x8xf32>
    %73 = arith.addf %43, %72 : vector<1x8xf32>
    %74 = vector.shape_cast %73 : vector<1x8xf32> to vector<1x1x8xf32>
    %cst_24 = arith.constant dense<0.000000e+00> : vector<1xf32>
    %75 = vector.multi_reduction <add>, %74, %cst_24 [1, 2] : vector<1x1x8xf32> to vector<1xf32>
    %76 = vector.shape_cast %75 : vector<1xf32> to vector<1x1x1xf32>
    %77 = vector.extract %76[0, 0, 0] : f32 from vector<1x1x1xf32>
    %78 = vector.broadcast %77 : f32 to vector<1x1xf32>
    %cst_25 = arith.constant 8.000000e+00 : f32
    %79 = vector.broadcast %cst_25 : f32 to vector<1x1xf32>
    %80 = arith.divf %78, %79 : vector<1x1xf32>
    %81 = vector.broadcast %80 : vector<1x1xf32> to vector<1x8xf32>
    %82 = arith.subf %73, %81 : vector<1x8xf32>
    %83 = arith.mulf %82, %82 : vector<1x8xf32>
    %84 = vector.shape_cast %83 : vector<1x8xf32> to vector<1x1x8xf32>
    %cst_26 = arith.constant dense<0.000000e+00> : vector<1xf32>
    %85 = vector.multi_reduction <add>, %84, %cst_26 [1, 2] : vector<1x1x8xf32> to vector<1xf32>
    %86 = vector.shape_cast %85 : vector<1xf32> to vector<1x1x1xf32>
    %87 = vector.extract %86[0, 0, 0] : f32 from vector<1x1x1xf32>
    %88 = vector.broadcast %87 : f32 to vector<1x1xf32>
    %cst_27 = arith.constant 8.000000e+00 : f32
    %89 = vector.broadcast %cst_27 : f32 to vector<1x1xf32>
    %90 = arith.divf %88, %89 : vector<1x1xf32>
    %91 = vector.broadcast %80 : vector<1x1xf32> to vector<1x8xf32>
    %92 = arith.subf %73, %91 : vector<1x8xf32>
    %cst_28 = arith.constant 9.99999974E-6 : f32
    %93 = vector.broadcast %cst_28 : f32 to vector<1x1xf32>
    %94 = arith.addf %90, %93 : vector<1x1xf32>
    %95 = math.rsqrt %94 : vector<1x1xf32>
    %96 = vector.broadcast %95 : vector<1x1xf32> to vector<1x8xf32>
    %97 = arith.mulf %92, %96 : vector<1x8xf32>
    %98 = arith.mulf %97, %5 : vector<1x8xf32>
    %99 = arith.addf %98, %6 : vector<1x8xf32>
    %cst_29 = arith.constant 0.000000e+00 : f32
    %100 = vector.broadcast %cst_29 : f32 to vector<1x8xf32>
    %101 = arith.maximumf %99, %100 : vector<1x8xf32>
    %102 = vector.broadcast %101 : vector<1x8xf32> to vector<4x8xf32>
    %103 = arith.mulf %9, %102 : vector<4x8xf32>
    %cst_30 = arith.constant dense<0.000000e+00> : vector<4xf32>
    %104 = vector.multi_reduction <add>, %103, %cst_30 [1] : vector<4x8xf32> to vector<4xf32>
    %105 = vector.shape_cast %104 : vector<4xf32> to vector<4x1xf32>
    %106 = arith.addf %105, %10 : vector<4x1xf32>
    %107 = vector.extract_strided_slice %12 {offsets = [0, 0], sizes = [4, 256], strides = [1, 1]} : vector<4x512xf32> to vector<4x256xf32>
    %108 = vector.broadcast %106 : vector<4x1xf32> to vector<4x256xf32>
    %109 = arith.addf %107, %108 : vector<4x256xf32>
    %110 = vector.shape_cast %109 : vector<4x256xf32> to vector<1x4x256xf32>
    %cst_31 = arith.constant dense<0.000000e+00> : vector<1xf32>
    %111 = vector.multi_reduction <add>, %110, %cst_31 [1, 2] : vector<1x4x256xf32> to vector<1xf32>
    %112 = vector.shape_cast %111 : vector<1xf32> to vector<1x1x1xf32>
    %113 = vector.extract %112[0, 0, 0] : f32 from vector<1x1x1xf32>
    %114 = vector.broadcast %113 : f32 to vector<1x1xf32>
    %115 = arith.mulf %109, %109 : vector<4x256xf32>
    %116 = vector.shape_cast %115 : vector<4x256xf32> to vector<1x4x256xf32>
    %cst_32 = arith.constant dense<0.000000e+00> : vector<1xf32>
    %117 = vector.multi_reduction <add>, %116, %cst_32 [1, 2] : vector<1x4x256xf32> to vector<1xf32>
    %118 = vector.shape_cast %117 : vector<1xf32> to vector<1x1x1xf32>
    %119 = vector.extract %118[0, 0, 0] : f32 from vector<1x1x1xf32>
    %120 = vector.broadcast %119 : f32 to vector<1x1xf32>
    %cst_33 = arith.constant 9.765625E-4 : f32
    %121 = vector.broadcast %cst_33 : f32 to vector<1x1xf32>
    %122 = arith.mulf %114, %121 : vector<1x1xf32>
    %cst_34 = arith.constant 9.765625E-4 : f32
    %123 = vector.broadcast %cst_34 : f32 to vector<1x1xf32>
    %124 = arith.mulf %120, %123 : vector<1x1xf32>
    %125 = arith.mulf %122, %122 : vector<1x1xf32>
    %126 = arith.subf %124, %125 : vector<1x1xf32>
    %cst_35 = arith.constant 0.000000e+00 : f32
    %127 = vector.broadcast %cst_35 : f32 to vector<1x1xf32>
    %128 = arith.maximumf %126, %127 : vector<1x1xf32>
    %129 = vector.broadcast %122 : vector<1x1xf32> to vector<4x256xf32>
    %130 = arith.subf %109, %129 : vector<4x256xf32>
    %cst_36 = arith.constant 9.99999974E-6 : f32
    %131 = vector.broadcast %cst_36 : f32 to vector<1x1xf32>
    %132 = arith.addf %128, %131 : vector<1x1xf32>
    %133 = math.rsqrt %132 : vector<1x1xf32>
    %134 = vector.broadcast %133 : vector<1x1xf32> to vector<4x256xf32>
    %135 = arith.mulf %130, %134 : vector<4x256xf32>
    %cst_37 = arith.constant 0.000000e+00 : f32
    %136 = vector.broadcast %cst_37 : f32 to vector<4x256xf32>
    %137 = arith.maximumf %135, %136 : vector<4x256xf32>
    %c0_38 = arith.constant 0 : index
    %c0_39 = arith.constant 0 : index
    %c0_40 = arith.constant 0 : index
    %138 = vector.load %arg7[%c0_38, %c0_39, %c0_40] : memref<1x4x512xf32, #tpu.memory_space<vmem>>, vector<1x4x256xf32>
    %139 = vector.shape_cast %138 : vector<1x4x256xf32> to vector<4x256xf32>
    %140 = vector.shape_cast %137 : vector<4x256xf32> to vector<1x4x256xf32>
    tpu.vector_store %arg7[%c0_38, %c0_39, %c0_40], %140 {strides = array<i32>} : memref<1x4x512xf32, #tpu.memory_space<vmem>>, vector<1x4x256xf32>,
    %141 = vector.extract_strided_slice %1 {offsets = [0, 256], sizes = [4, 256], strides = [1, 1]} : vector<4x512xf32> to vector<4x256xf32>
    %142 = vector.extract_strided_slice %141 {offsets = [0, 0], sizes = [2, 256], strides = [1, 1]} : vector<4x256xf32> to vector<2x256xf32>
    %143 = vector.broadcast %2 : vector<2x1xf32> to vector<2x256xf32>
    %144 = arith.mulf %142, %143 : vector<2x256xf32>
    %cst_41 = arith.constant dense<0.000000e+00> : vector<256xf32>
    %145 = vector.multi_reduction <add>, %144, %cst_41 [0] : vector<2x256xf32> to vector<256xf32>
    %146 = vector.shape_cast %145 : vector<256xf32> to vector<1x256xf32>
    %cst_42 = arith.constant dense<0xFF800000> : vector<1xf32>
    %147 = vector.multi_reduction <maximumf>, %146, %cst_42 [1] : vector<1x256xf32> to vector<1xf32>
    %148 = vector.shape_cast %147 : vector<1xf32> to vector<1x1xf32>
    %149 = vector.broadcast %148 : vector<1x1xf32> to vector<1x256xf32>
    %150 = arith.subf %146, %149 : vector<1x256xf32>
    %151 = math.exp %150 : vector<1x256xf32>
    %cst_43 = arith.constant dense<0.000000e+00> : vector<1xf32>
    %152 = vector.multi_reduction <add>, %151, %cst_43 [1] : vector<1x256xf32> to vector<1xf32>
    %153 = vector.shape_cast %152 : vector<1xf32> to vector<1x1xf32>
    %154 = tpu.reciprocal %153 {approx = true} : vector<1x1xf32> -> vector<1x1xf32>
    %155 = arith.mulf %153, %154 : vector<1x1xf32>
    %cst_44 = arith.constant 2.000000e+00 : f32
    %156 = vector.broadcast %cst_44 : f32 to vector<1x1xf32>
    %157 = arith.subf %156, %155 : vector<1x1xf32>
    %158 = arith.mulf %154, %157 : vector<1x1xf32>
    %159 = vector.broadcast %158 : vector<1x1xf32> to vector<1x256xf32>
    %160 = arith.mulf %151, %159 : vector<1x256xf32>
    %161 = vector.extract_strided_slice %141 {offsets = [0, 0], sizes = [2, 256], strides = [1, 1]} : vector<4x256xf32> to vector<2x256xf32>
    %162 = vector.broadcast %160 : vector<1x256xf32> to vector<2x256xf32>
    %163 = arith.mulf %161, %162 : vector<2x256xf32>
    %cst_45 = arith.constant dense<0.000000e+00> : vector<2xf32>
    %164 = vector.multi_reduction <add>, %163, %cst_45 [1] : vector<2x256xf32> to vector<2xf32>
    %165 = vector.shape_cast %164 : vector<2xf32> to vector<2x1xf32>
    %166 = vector.extract_strided_slice %7 {offsets = [0, 0], sizes = [2, 8], strides = [1, 1]} : vector<4x8xf32> to vector<2x8xf32>
    %167 = vector.broadcast %165 : vector<2x1xf32> to vector<2x8xf32>
    %168 = arith.mulf %166, %167 : vector<2x8xf32>
    %cst_46 = arith.constant dense<0.000000e+00> : vector<8xf32>
    %169 = vector.multi_reduction <add>, %168, %cst_46 [0] : vector<2x8xf32> to vector<8xf32>
    %170 = vector.shape_cast %169 : vector<8xf32> to vector<1x8xf32>
    %171 = arith.addf %4, %170 : vector<1x8xf32>
    %172 = vector.extract_strided_slice %141 {offsets = [2, 0], sizes = [2, 256], strides = [1, 1]} : vector<4x256xf32> to vector<2x256xf32>
    %173 = vector.broadcast %2 : vector<2x1xf32> to vector<2x256xf32>
    %174 = arith.mulf %172, %173 : vector<2x256xf32>
    %cst_47 = arith.constant dense<0.000000e+00> : vector<256xf32>
    %175 = vector.multi_reduction <add>, %174, %cst_47 [0] : vector<2x256xf32> to vector<256xf32>
    %176 = vector.shape_cast %175 : vector<256xf32> to vector<1x256xf32>
    %cst_48 = arith.constant dense<0xFF800000> : vector<1xf32>
    %177 = vector.multi_reduction <maximumf>, %176, %cst_48 [1] : vector<1x256xf32> to vector<1xf32>
    %178 = vector.shape_cast %177 : vector<1xf32> to vector<1x1xf32>
    %179 = vector.broadcast %178 : vector<1x1xf32> to vector<1x256xf32>
    %180 = arith.subf %176, %179 : vector<1x256xf32>
    %181 = math.exp %180 : vector<1x256xf32>
    %cst_49 = arith.constant dense<0.000000e+00> : vector<1xf32>
    %182 = vector.multi_reduction <add>, %181, %cst_49 [1] : vector<1x256xf32> to vector<1xf32>
    %183 = vector.shape_cast %182 : vector<1xf32> to vector<1x1xf32>
    %184 = tpu.reciprocal %183 {approx = true} : vector<1x1xf32> -> vector<1x1xf32>
    %185 = arith.mulf %183, %184 : vector<1x1xf32>
    %cst_50 = arith.constant 2.000000e+00 : f32
    %186 = vector.broadcast %cst_50 : f32 to vector<1x1xf32>
    %187 = arith.subf %186, %185 : vector<1x1xf32>
    %188 = arith.mulf %184, %187 : vector<1x1xf32>
    %189 = vector.broadcast %188 : vector<1x1xf32> to vector<1x256xf32>
    %190 = arith.mulf %181, %189 : vector<1x256xf32>
    %191 = vector.extract_strided_slice %141 {offsets = [2, 0], sizes = [2, 256], strides = [1, 1]} : vector<4x256xf32> to vector<2x256xf32>
    %192 = vector.broadcast %190 : vector<1x256xf32> to vector<2x256xf32>
    %193 = arith.mulf %191, %192 : vector<2x256xf32>
    %cst_51 = arith.constant dense<0.000000e+00> : vector<2xf32>
    %194 = vector.multi_reduction <add>, %193, %cst_51 [1] : vector<2x256xf32> to vector<2xf32>
    %195 = vector.shape_cast %194 : vector<2xf32> to vector<2x1xf32>
    %196 = vector.extract_strided_slice %7 {offsets = [2, 0], sizes = [2, 8], strides = [1, 1]} : vector<4x8xf32> to vector<2x8xf32>
    %197 = vector.broadcast %195 : vector<2x1xf32> to vector<2x8xf32>
    %198 = arith.mulf %196, %197 : vector<2x8xf32>
    %cst_52 = arith.constant dense<0.000000e+00> : vector<8xf32>
    %199 = vector.multi_reduction <add>, %198, %cst_52 [0] : vector<2x8xf32> to vector<8xf32>
    %200 = vector.shape_cast %199 : vector<8xf32> to vector<1x8xf32>
    %201 = arith.addf %171, %200 : vector<1x8xf32>
    %202 = vector.shape_cast %201 : vector<1x8xf32> to vector<1x1x8xf32>
    %cst_53 = arith.constant dense<0.000000e+00> : vector<1xf32>
    %203 = vector.multi_reduction <add>, %202, %cst_53 [1, 2] : vector<1x1x8xf32> to vector<1xf32>
    %204 = vector.shape_cast %203 : vector<1xf32> to vector<1x1x1xf32>
    %205 = vector.extract %204[0, 0, 0] : f32 from vector<1x1x1xf32>
    %206 = vector.broadcast %205 : f32 to vector<1x1xf32>
    %cst_54 = arith.constant 8.000000e+00 : f32
    %207 = vector.broadcast %cst_54 : f32 to vector<1x1xf32>
    %208 = arith.divf %206, %207 : vector<1x1xf32>
    %209 = vector.broadcast %208 : vector<1x1xf32> to vector<1x8xf32>
    %210 = arith.subf %201, %209 : vector<1x8xf32>
    %211 = arith.mulf %210, %210 : vector<1x8xf32>
    %212 = vector.shape_cast %211 : vector<1x8xf32> to vector<1x1x8xf32>
    %cst_55 = arith.constant dense<0.000000e+00> : vector<1xf32>
    %213 = vector.multi_reduction <add>, %212, %cst_55 [1, 2] : vector<1x1x8xf32> to vector<1xf32>
    %214 = vector.shape_cast %213 : vector<1xf32> to vector<1x1x1xf32>
    %215 = vector.extract %214[0, 0, 0] : f32 from vector<1x1x1xf32>
    %216 = vector.broadcast %215 : f32 to vector<1x1xf32>
    %cst_56 = arith.constant 8.000000e+00 : f32
    %217 = vector.broadcast %cst_56 : f32 to vector<1x1xf32>
    %218 = arith.divf %216, %217 : vector<1x1xf32>
    %219 = vector.broadcast %208 : vector<1x1xf32> to vector<1x8xf32>
    %220 = arith.subf %201, %219 : vector<1x8xf32>
    %cst_57 = arith.constant 9.99999974E-6 : f32
    %221 = vector.broadcast %cst_57 : f32 to vector<1x1xf32>
    %222 = arith.addf %218, %221 : vector<1x1xf32>
    %223 = math.rsqrt %222 : vector<1x1xf32>
    %224 = vector.broadcast %223 : vector<1x1xf32> to vector<1x8xf32>
    %225 = arith.mulf %220, %224 : vector<1x8xf32>
    %226 = arith.mulf %225, %5 : vector<1x8xf32>
    %227 = arith.addf %226, %6 : vector<1x8xf32>
    %cst_58 = arith.constant 0.000000e+00 : f32
    %228 = vector.broadcast %cst_58 : f32 to vector<1x8xf32>
    %229 = arith.maximumf %227, %228 : vector<1x8xf32>
    %230 = vector.broadcast %229 : vector<1x8xf32> to vector<4x8xf32>
    %231 = arith.mulf %9, %230 : vector<4x8xf32>
    %cst_59 = arith.constant dense<0.000000e+00> : vector<4xf32>
    %232 = vector.multi_reduction <add>, %231, %cst_59 [1] : vector<4x8xf32> to vector<4xf32>
    %233 = vector.shape_cast %232 : vector<4xf32> to vector<4x1xf32>
    %234 = arith.addf %233, %10 : vector<4x1xf32>
    %235 = vector.extract_strided_slice %12 {offsets = [0, 256], sizes = [4, 256], strides = [1, 1]} : vector<4x512xf32> to vector<4x256xf32>
    %236 = vector.broadcast %234 : vector<4x1xf32> to vector<4x256xf32>
    %237 = arith.addf %235, %236 : vector<4x256xf32>
    %238 = vector.shape_cast %237 : vector<4x256xf32> to vector<1x4x256xf32>
    %cst_60 = arith.constant dense<0.000000e+00> : vector<1xf32>
    %239 = vector.multi_reduction <add>, %238, %cst_60 [1, 2] : vector<1x4x256xf32> to vector<1xf32>
    %240 = vector.shape_cast %239 : vector<1xf32> to vector<1x1x1xf32>
    %241 = vector.extract %240[0, 0, 0] : f32 from vector<1x1x1xf32>
    %242 = vector.broadcast %241 : f32 to vector<1x1xf32>
    %243 = arith.mulf %237, %237 : vector<4x256xf32>
    %244 = vector.shape_cast %243 : vector<4x256xf32> to vector<1x4x256xf32>
    %cst_61 = arith.constant dense<0.000000e+00> : vector<1xf32>
    %245 = vector.multi_reduction <add>, %244, %cst_61 [1, 2] : vector<1x4x256xf32> to vector<1xf32>
    %246 = vector.shape_cast %245 : vector<1xf32> to vector<1x1x1xf32>
    %247 = vector.extract %246[0, 0, 0] : f32 from vector<1x1x1xf32>
    %248 = vector.broadcast %247 : f32 to vector<1x1xf32>
    %cst_62 = arith.constant 9.765625E-4 : f32
    %249 = vector.broadcast %cst_62 : f32 to vector<1x1xf32>
    %250 = arith.mulf %242, %249 : vector<1x1xf32>
    %cst_63 = arith.constant 9.765625E-4 : f32
    %251 = vector.broadcast %cst_63 : f32 to vector<1x1xf32>
    %252 = arith.mulf %248, %251 : vector<1x1xf32>
    %253 = arith.mulf %250, %250 : vector<1x1xf32>
    %254 = arith.subf %252, %253 : vector<1x1xf32>
    %cst_64 = arith.constant 0.000000e+00 : f32
    %255 = vector.broadcast %cst_64 : f32 to vector<1x1xf32>
    %256 = arith.maximumf %254, %255 : vector<1x1xf32>
    %257 = vector.broadcast %250 : vector<1x1xf32> to vector<4x256xf32>
    %258 = arith.subf %237, %257 : vector<4x256xf32>
    %cst_65 = arith.constant 9.99999974E-6 : f32
    %259 = vector.broadcast %cst_65 : f32 to vector<1x1xf32>
    %260 = arith.addf %256, %259 : vector<1x1xf32>
    %261 = math.rsqrt %260 : vector<1x1xf32>
    %262 = vector.broadcast %261 : vector<1x1xf32> to vector<4x256xf32>
    %263 = arith.mulf %258, %262 : vector<4x256xf32>
    %cst_66 = arith.constant 0.000000e+00 : f32
    %264 = vector.broadcast %cst_66 : f32 to vector<4x256xf32>
    %265 = arith.maximumf %263, %264 : vector<4x256xf32>
    %c0_67 = arith.constant 0 : index
    %c0_68 = arith.constant 0 : index
    %c256 = arith.constant 256 : index
    %266 = vector.load %arg7[%c0_67, %c0_68, %c256] : memref<1x4x512xf32, #tpu.memory_space<vmem>>, vector<1x4x256xf32>
    %267 = vector.shape_cast %266 : vector<1x4x256xf32> to vector<4x256xf32>
    %268 = vector.shape_cast %265 : vector<4x256xf32> to vector<1x4x256xf32>
    tpu.vector_store %arg7[%c0_67, %c0_68, %c256], %268 {strides = array<i32>} : memref<1x4x512xf32, #tpu.memory_space<vmem>>, vector<1x4x256xf32>,
    return
  }
  func.func @transform_0(%arg0: i32) -> (i32, i32, i32) {
    %c0_i32 = arith.constant 0 : i32
    %c0_i32_0 = arith.constant 0 : i32
    %c0_i32_1 = arith.constant 0 : i32
    return %arg0, %c0_i32, %c0_i32_0 : i32, i32, i32
  }
  func.func @transform_1(%arg0: i32) -> (i32, i32) {
    %c0_i32 = arith.constant 0 : i32
    %c0_i32_0 = arith.constant 0 : i32
    %c0_i32_1 = arith.constant 0 : i32
    return %c0_i32, %c0_i32_0 : i32, i32
  }
  func.func @transform_2(%arg0: i32) -> (i32, i32) {
    %c0_i32 = arith.constant 0 : i32
    %c0_i32_0 = arith.constant 0 : i32
    %c0_i32_1 = arith.constant 0 : i32
    return %c0_i32, %c0_i32_0 : i32, i32
  }
  func.func @transform_3(%arg0: i32) -> (i32, i32) {
    %c0_i32 = arith.constant 0 : i32
    %c0_i32_0 = arith.constant 0 : i32
    %c0_i32_1 = arith.constant 0 : i32
    return %c0_i32, %c0_i32_0 : i32, i32
  }
  func.func @transform_4(%arg0: i32) -> (i32, i32) {
    %c0_i32 = arith.constant 0 : i32
    %c0_i32_0 = arith.constant 0 : i32
    %c0_i32_1 = arith.constant 0 : i32
    return %c0_i32, %c0_i32_0 : i32, i32
  }
  func.func @transform_5(%arg0: i32) -> (i32, i32) {
    %c0_i32 = arith.constant 0 : i32
    %c0_i32_0 = arith.constant 0 : i32
    %c0_i32_1 = arith.constant 0 : i32
    return %c0_i32, %c0_i32_0 : i32, i32
  }
  func.func @transform_6(%arg0: i32) -> (i32, i32, i32) {
    %c0_i32 = arith.constant 0 : i32
    %c0_i32_0 = arith.constant 0 : i32
    %c0_i32_1 = arith.constant 0 : i32
    return %arg0, %c0_i32, %c0_i32_0 : i32, i32, i32
  }
}

</mosaic_0001>

<bundles_post_ra>
// kernel: tpu_custom_call.1
= control target key start
LH: loop header
LB: loop body
LE: loop exit
PB: predicated region body
PF: predicated region fallthrough
CT: control target
= control target key end

     0   :  { %11 = vsyncpa [#allocation3], 0  ;;  %s1844_s0 = inlined_call_operand.hbm [shape: f32[1,4,512], index: 0, kind: input, shape index: {}]   ;;  %s1845_s1 = inlined_call_operand.vmem [shape: f32[2,1], index: 1, kind: input, shape index: {}]   ;;  %s1846_s2 = inlined_call_operand.vmem [shape: f32[3,8], index: 2, kind: input, shape index: {}]   ;;  %s1847_s3 = inlined_call_operand.vmem [shape: f32[4,8], index: 3, kind: input, shape index: {}]   ;;  %s1848_s4 = inlined_call_operand.vmem [shape: f32[4,9], index: 4, kind: input, shape index: {}]   ;;  %s1849_s5 = inlined_call_operand.vmem [shape: f32[4,4], index: 5, kind: input, shape index: {}]   ;;  %s1850_s6 = inlined_call_operand.hbm [shape: f32[1,4,512], index: 6, kind: output, shape index: {}]  }
   0x1   :  { %12 = vsyncpa [#allocation4], 0  ;;  %s1591_s21 = smov [#allocation2]   ;;  %s1543_s25 = scalar_lea.hbm %s1844_s0, 256 }
   0x2   :  { %s19_s22 = sshll.u32 %s1591_s21, 4  ;;  %p1544_p0 = scmp.ne.s32.totalorder %s1844_s0, %s1543_s25  ;;  %s20_s22 = int_to_ptr.vmem [resolvable:$true] %s19_s22 }
   0x3   :  { %p1547_p1 = scmp.lt.u32.totalorder %s1543_s25, %s1844_s0 }
   0x5   :  { %p1549_p2 = pnand %p1547_p1, %p1544_p0 }
   0x7   :  { %1552 = shalt.err (!%p1549_p2)
}
   0x8   :  { %s1553_s30 = scalar_lea.vmem %s20_s22, 256  ;;  %p1558_p4 = scmp.lt.s32.totalorder %s20_s22, %s20_s22 }
   0x9   :  { %p1554_p3 = scmp.ne.s32.totalorder %s20_s22, %s1553_s30  ;;  %p1559_p5 = scmp.lt.s32.totalorder %s1553_s30, %s1553_s30 }
   0xb   :  { %p1560_p6 = por %p1559_p5, %p1558_p4 }
   0xd   :  { %p1561_p7 = pnand %p1560_p6, %p1554_p3 }
   0xf   :  { %1564 = shalt.err (!%p1561_p7)
}
  0x10   :  { %22 = dma.hbm_to_vmem [thread:$0]  %s1844_s0, 256, %s20_s22, [#allocation3]  }
  0x11   :  { %1587 = dma.done.wait [#allocation3], 256  }
  0x12   :  { %1588 = vsyncadd [#allocation3], 4294967040  ;;  %v1592_v0 = vmov 0   ;;  %v38_v1 = vld [vmem:[%s1845_s1] sm:$0x3]  ;;  %v997_v4 = vlaneseq  ;;  %vm1006_vm0 = vcmask 1041408  }
  0x13   :  { %1506 = vset.pattern.permute.xlu0 %v1592_v0  ;;  %v1593_v2 = vmov 839922192   ;;  %v1650_v9 = vld [vmem:[#allocation2] sm:$0xff]  ;;  %vm1112_vm1 = vcmask 1043458   ;;  %vm1053_vm2 = vcmask 58368   ;;  %vm1130_vm3 = vcmask 57344  }
  0x14   :  { %992 = vperm.xlu0 %1506, %v38_v1   ;;  %v995_v3 = vunpack.c.l.s4 %v1593_v2  ;;  %v1647_v6 = vshrl.u32 %v997_v4, 7  ;;  %vm47_vm4 = vcmask 31744   ;;  %vm51_vm5 = vcmask 1043456   ;;  %s1596_s21 = smov [#allocation5]  }
  0x15   :  { %vm1174_vm6 = vcmask 60416   ;;  %s1455_s22 = sshll.u32 %s1596_s21, 4  ;;  %s1456_s22 = int_to_ptr.vmem [resolvable:$true] %s1455_s22 }
  0x16   :  { %v996_v5 = vunpack.c.0.s8 %v995_v3  ;;  %s1565_s23 = scalar_lea.vmem %s1456_s22, 256  ;;  %p1570_p9 = scmp.lt.s32.totalorder %s1456_s22, %s1456_s22 }
  0x17   :  { %p1566_p8 = scmp.ne.s32.totalorder %s1456_s22, %s1565_s23  ;;  %p1571_p10 = scmp.lt.s32.totalorder %s1565_s23, %s1565_s23 }
  0x18   :  { %v999_v7 = vsub.s32 %v996_v5, %v1647_v6 }
  0x19   :  { %p1572_p11 = por %p1571_p10, %p1570_p9 }
  0x1b   :  { %p1573_p12 = pnand %p1572_p11, %p1566_p8 }
  0x93   :  { %v993_v8 = vpop.permute.xlu0 %992 }
  0x94   :  { %v1652_v10 = vrot.slane %v993_v8, %v999_v7 }
  0x96   :  { %v1002_v11 = vmul.f32 %v1652_v10, %v1650_v9  ;;  %v1062_v12 = vrot.slane %v1652_v10, 6 }
  0x98   :  { %v1004_v13 = vcombine.high %v1002_v11, %v1002_v11  ;;  %v1064_v14 = vmul.f32 %v1062_v12, %v1650_v9  ;;  %v1007_v15 = vsel %vm1006_vm0, %v1002_v11, 0.0 }
  0x99   :  { %v1008_v18 = vrot.slane %v1007_v15, 4 }
  0x9a   :  { %v1066_v16 = vcombine.high %v1064_v14, %v1064_v14  ;;  %v1067_v17 = vrot.slane %v1064_v14, 2  ;;  %v1014_v19 = vsel %vm1006_vm0, %v1004_v13, 0.0 }
  0x9b   :  { %v1015_v20 = vrot.slane %v1014_v19, 4  ;;  %v1009_v22 = vadd.f32 %v1008_v18, %v1007_v15 }
  0x9c   :  { %v1068_v21 = vrot.slane %v1066_v16, 2  ;;  %v1071_v23 = vsel %vm1006_vm0, %v1067_v17, 0.0 }
  0x9d   :  { %v1016_v24 = vadd.f32 %v1015_v20, %v1014_v19  ;;  %v1072_v25 = vrot.slane %v1071_v23, 4  ;;  %v1010_v26 = vrot.slane %v1009_v22, 2 }
  0x9e   :  { %v1078_v27 = vsel %vm1006_vm0, %v1068_v21, 0.0 }
  0x9f   :  { %v1017_v28 = vrot.slane %v1016_v24, 2  ;;  %v1073_v29 = vadd.f32 %v1072_v25, %v1071_v23  ;;  %v1079_v30 = vrot.slane %v1078_v27, 4  ;;  %v1011_v31 = vadd.f32 %v1010_v26, %v1009_v22 }
  0xa1   :  { %v1018_v32 = vadd.f32 %v1017_v28, %v1016_v24  ;;  %v1074_v33 = vrot.slane %v1073_v29, 2  ;;  %v1080_v34 = vadd.f32 %v1079_v30, %v1078_v27  ;;  %v1012_v35 = vrot.slane %v1011_v31, 1 }
  0xa3   :  { %v1019_v36 = vrot.slane %v1018_v32, 1  ;;  %v1075_v37 = vadd.f32 %v1074_v33, %v1073_v29  ;;  %v1081_v38 = vrot.slane %v1080_v34, 2  ;;  %v1013_v39 = vadd.f32 %v1012_v35, %v1011_v31  ;;  %v1673_v31 = vld [vmem:[%s1847_s3] sm:$0xf] }
  0xa5   :  { %v1020_v40 = vadd.f32 %v1019_v36, %v1018_v32  ;;  %v1076_v41 = vrot.slane %v1075_v37, 1  ;;  %v1082_v42 = vadd.f32 %v1081_v38, %v1080_v34 }
  0xa7   :  { %v1021_v43 = vmax.f32 %v1013_v39, %v1020_v40  ;;  %v1083_v44 = vrot.slane %v1082_v42, 1  ;;  %v1077_v45 = vadd.f32 %v1076_v41, %v1075_v37 }
  0xa9   :  { %1022 = vmax.xlane.f32.xlu1 %v1021_v43  ;;  %v1084_v46 = vadd.f32 %v1083_v44, %v1082_v42 }
  0xab   :  { %v1085_v47 = vmax.f32 %v1077_v45, %v1084_v46 }
  0xad   :  { %1086 = vmax.xlane.f32.xlu0 %v1085_v47 }
 0x136   :  { %v1023_v48 = vpop.xlane.xlu1 %1022 }
 0x137   :  { %v1024_v49 = vsub.f32 %v1013_v39, %v1023_v48  ;;  %v1025_v50 = vsub.f32 %v1020_v40, %v1023_v48 }
 0x139   :  { %v1026_v54 = vmul.f32 1.442695, %v1024_v49  ;;  %v1028_v57 = vmul.f32 1.442695, %v1025_v50  ;;  %v1682_v49 = vld [vmem:[%s1846_s2] sm:$0x7] }
 0x13a   :  { %v1087_v51 = vpop.xlane.xlu0 %1086 }
 0x13b   :  { %v1088_v52 = vsub.f32 %v1077_v45, %v1087_v51  ;;  %v1089_v53 = vsub.f32 %v1084_v46, %v1087_v51 }
 0x13d   :  { %v1090_v55 = vmul.f32 1.442695, %v1088_v52  ;;  %v1092_v56 = vmul.f32 1.442695, %v1089_v53 }
 0x13f   :  { %1511 = vpow2.f32 %v1090_v55 }
 0x140   :  { %1513 = vpow2.f32 %v1092_v56 }
 0x141   :  { %1515 = vpow2.f32 %v1026_v54 }
 0x142   :  { %1517 = vpow2.f32 %v1028_v57 }
 0x149   :  { %v1512_v58 = vpop.eup %1511 }
 0x14a   :  { %v1514_v59 = vpop.eup %1513 }
 0x14b   :  { %v1516_v60 = vpop.eup %1515  ;;  %v1094_v61 = vadd.f32 %v1514_v59, %v1512_v58 }
 0x14c   :  { %v1518_v62 = vpop.eup %1517 }
 0x14d   :  { %1095 = vadd.xlane.f32.xlu1 %v1094_v61  ;;  %v1030_v63 = vadd.f32 %v1518_v62, %v1516_v60 }
 0x151   :  { %1031 = vadd.xlane.f32.xlu1 %v1030_v63 }
 0x1da   :  { %v1096_v0 = vpop.xlane.xlu1 %1095 }
 0x1db   :  { %1519 = vrcp.f32 %v1096_v0 }
 0x1de   :  { %v1032_v1 = vpop.xlane.xlu1 %1031 }
 0x1df   :  { %1521 = vrcp.f32 %v1032_v1 }
 0x1e5   :  { %v1520_v2 = vpop.eup %1519 }
 0x1e6   :  { %v1098_v3 = vmul.f32 %v1520_v2, %v1096_v0 }
 0x1e8   :  { %v1099_v4 = vsub.f32 2.0, %v1098_v3 }
 0x1e9   :  { %v1522_v5 = vpop.eup %1521 }
 0x1ea   :  { %v1100_v7 = vmul.f32 %v1520_v2, %v1099_v4  ;;  %v1034_v8 = vmul.f32 %v1522_v5, %v1032_v1 }
 0x1ec   :  { %v1101_v11 = vmul.f32 %v1512_v58, %v1100_v7  ;;  %v1102_v13 = vmul.f32 %v1514_v59, %v1100_v7  ;;  %v1035_v14 = vsub.f32 2.0, %v1034_v8 }
 0x1ee   :  { %v1036_v15 = vmul.f32 %v1522_v5, %v1035_v14  ;;  %v1105_v16 = vcombine.low %v1101_v11, %v1102_v13 }
 0x1f0   :  { %v1037_v17 = vmul.f32 %v1516_v60, %v1036_v15  ;;  %v1038_v18 = vmul.f32 %v1518_v62, %v1036_v15  ;;  %v1106_v19 = vrot.slane %v1105_v16, 6  ;;  %v1686_v62 = vld [vmem:[#allocation2 + $0x8] sm:$0xff] }
 0x1f1   :  { %v1290_v63 = vmul.f32 %v1062_v12, %v1686_v62  ;;  %v1232_v1 = vmul.f32 %v1652_v10, %v1686_v62 }
 0x1f2   :  { %v1041_v20 = vcombine.low %v1037_v17, %v1038_v18  ;;  %v1108_v21 = vmul.f32 %v1106_v19, %v1650_v9 }
 0x1f3   :  { %v1292_v0 = vcombine.high %v1290_v63, %v1290_v63  ;;  %v1293_v3 = vrot.slane %v1290_v63, 2  ;;  %v1234_v4 = vcombine.high %v1232_v1, %v1232_v1  ;;  %v1236_v14 = vsel %vm1006_vm0, %v1232_v1, 0.0 }
 0x1f4   :  { %v1043_v22 = vmul.f32 %v1041_v20, %v1650_v9  ;;  %v1110_v24 = vcombine.high %v1108_v21, %v1108_v21  ;;  %v1113_v29 = vsel %vm1112_vm1, %v1108_v21, 0.0  ;;  %v1237_v12 = vrot.slane %v1236_v14, 4 }
 0x1f5   :  { %v1294_v2 = vrot.slane %v1292_v0, 2  ;;  %v1297_v7 = vsel %vm1006_vm0, %v1293_v3, 0.0  ;;  %v1243_v11 = vsel %vm1006_vm0, %v1234_v4, 0.0 }
 0x1f6   :  { %v1045_v23 = vcombine.high %v1043_v22, %v1043_v22  ;;  %v1047_v25 = vsel %vm1006_vm0, %v1043_v22, 0.0  ;;  %v1114_v28 = vsel %vm1112_vm1, %v1110_v24, 0.0  ;;  %v1298_v13 = vrot.slane %v1297_v7, 4 }
 0x1f7   :  { %v1115_v30 = vadd.f32 %v1114_v28, %v1113_v29  ;;  %v1304_v5 = vsel %vm1006_vm0, %v1294_v2, 0.0  ;;  %v1244_v16 = vrot.slane %v1243_v11, 4  ;;  %v1238_v20 = vadd.f32 %v1237_v12, %v1236_v14 }
 0x1f8   :  { %v1048_v26 = vsel %vm1006_vm0, %v1045_v23, 0.0  ;;  %v1305_v8 = vrot.slane %v1304_v5, 4  ;;  %v1299_v17 = vadd.f32 %v1298_v13, %v1297_v7 }
 0x1f9   :  { %v1049_v27 = vadd.f32 %v1048_v26, %v1047_v25  ;;  %v1245_v19 = vadd.f32 %v1244_v16, %v1243_v11  ;;  %v1239_v25 = vrot.slane %v1238_v20, 2 }
 0x1fa   :  { %v1306_v15 = vadd.f32 %v1305_v8, %v1304_v5  ;;  %v1300_v10 = vrot.slane %v1299_v17, 2 }
 0x1fb   :  { %1050 = vadd.xlane.f32.xlu1 %v1049_v27  ;;  %v1246_v22 = vrot.slane %v1245_v19, 2 }
 0x1fc   :  { %v1307_v18 = vrot.slane %v1306_v15, 2  ;;  %v1301_v24 = vadd.f32 %v1300_v10, %v1299_v17 }
 0x1fd   :  { %v1247_v28 = vadd.f32 %v1246_v22, %v1245_v19 }
 0x1fe   :  { %v1308_v21 = vadd.f32 %v1307_v18, %v1306_v15 }
 0x1ff   :  { %1116 = vadd.xlane.f32.xlu1 %v1115_v30  ;;  %v1302_v30 = vrot.slane %v1301_v24, 1 }
 0x200   :  { %v1309_v27 = vrot.slane %v1308_v21, 1 }
 0x288   :  { %v1051_v32 = vpop.xlane.xlu1 %1050 }
 0x289   :  { %v1052_v33 = vmul.f32 %v1051_v32, %v1673_v31  ;;  %v1240_v32 = vadd.f32 %v1239_v25, %v1238_v20 }
 0x28b   :  { %v1054_v34 = vsel %vm1053_vm2, %v1052_v33, 0.0 }
 0x28c   :  { %v1055_v35 = vrot.slane %v1054_v34, 4  ;;  %v1117_v36 = vpop.xlane.xlu1 %1116 }
 0x28d   :  { %v1118_v37 = vmul.f32 %v1117_v36, %v1673_v31 }
 0x28e   :  { %v1056_v38 = vadd.f32 %v1055_v35, %v1054_v34  ;;  %v1701_v34 = vadd.f32 %v1309_v27, %v1308_v21  ;;  %v1248_v35 = vrot.slane %v1247_v28, 1 }
 0x28f   :  { %v1120_v39 = vrot.slane %v1118_v37, 2  ;;  %v1704_v37 = vadd.f32 %v1302_v30, %v1301_v24  ;;  %v1162_v30 = vrot.slane %v1682_v49, 1 }
 0x290   :  { %v1057_v40 = vrot.slane %v1056_v38, 2 }
 0x291   :  { %v1122_v41 = vsel %vm1053_vm2, %v1120_v39, 0.0  ;;  %v1311_v39 = vmax.f32 %v1704_v37, %v1701_v34 }
 0x292   :  { %v1058_v42 = vadd.f32 %v1057_v40, %v1056_v38  ;;  %v1123_v43 = vrot.slane %v1122_v41, 4  ;;  %v1241_v38 = vrot.slane %v1240_v32, 1  ;;  %v1708_v40 = vadd.f32 %v1248_v35, %v1247_v28 }
 0x294   :  { %v1059_v44 = vrot.slane %v1058_v42, 1  ;;  %v1124_v45 = vadd.f32 %v1123_v43, %v1122_v41  ;;  %v1710_v41 = vadd.f32 %v1241_v38, %v1240_v32  ;;  %v42_v43 = vld [vmem:[%s1849_s5] sm:$0xf] }
 0x296   :  { %v1125_v46 = vrot.slane %v1124_v45, 2  ;;  %v1060_v48 = vadd.f32 %v1059_v44, %v1058_v42  ;;  %v1250_v42 = vmax.f32 %v1710_v41, %v1708_v40  ;;  %v49_v44 = vsel %vm47_vm4, %v42_v43, 0 }
 0x298   :  { %v1126_v47 = vadd.f32 %v1125_v46, %v1124_v45  ;;  %v1061_v51 = vadd.f32 %v1060_v48, %v1682_v49  ;;  %v1717_v45 = vand.u32 4294901760, %v49_v44  ;;  %v52_v48 = vsel %vm51_vm5, %v1650_v9, 0 }
 0x29a   :  { %v1127_v50 = vrot.slane %v1126_v47, 1  ;;  %v1720_v46 = vsub.f32 %v49_v44, %v1717_v45 }
 0x29c   :  { %v1128_v52 = vadd.f32 %v1127_v50, %v1126_v47  ;;  %v45_v47 = vcombine.high %v1650_v9, %v1650_v9  ;;  %v1594_v50 = vmov 0.0  }
 0x29d   :  { %126 = vmatprep.mubr.f32.mxu0 %v1594_v50  ;;  %591 = vmatprep.mubr.f32.mxu1 %v1594_v50 }
 0x29e   :  { %v1129_v53 = vadd.f32 %v1128_v52, %v1061_v51  ;;  %v1728_v51 = vand.u32 4294901760, %v1720_v46  ;;  %v54_v52 = vsel %vm51_vm5, %v45_v47, 0 }
 0x2a0   :  { %v1131_v54 = vsel %vm1130_vm3, %v1129_v53, 0.0 }
 0x2a1   :  { %1132 = vadd.xlane.f32.xlu1 %v1131_v54  ;;  %v60_v54 = vand.u32 4294901760, %v54_v52 }
 0x2a3   :  { %61 = vmatprep.subr.mxu0 %v60_v54  ;;  %v139_v9 = vsub.f32 %v54_v52, %v60_v54 }
 0x32e   :  { %v1133_v55 = vpop.xlane.xlu1 %1132 }
 0x32f   :  { %v1134_v56 = vrot.slane %v1133_v55, 4 }
 0x331   :  { %v1135_v57 = vadd.f32 %v1134_v56, %v1133_v55  ;;  %v130_v55 = vsub.f32 %v1720_v46, %v1728_v51 }
 0x333   :  { %v1136_v58 = vrot.slane %v1135_v57, 2 }
 0x335   :  { %v1137_v59 = vadd.f32 %v1136_v58, %v1135_v57  ;;  %v1734_v57 = vand.u32 4294901760, %v130_v55 }
 0x337   :  { %v1138_v60 = vrot.slane %v1137_v59, 1 }
 0x339   :  { %v1139_v61 = vadd.f32 %v1138_v60, %v1137_v59  ;;  %v140_v59 = vand.u32 4294901760, %v139_v9 }
 0x33b   :  { %1484 = vpush %v1139_v61  ;;  %v141_v61 = vsub.f32 %v139_v9, %v140_v59 }
 0x33d   :  { %v142_v0 = vand.u32 4294901760, %v141_v61 }
 0x36c   :  { %s1485_s2 = spop %1484 }
 0x36d   :  { %v1141_v23 = vstv %s1485_s2 }
 0x36e   :  { %v1143_v26 = vmul.f32 0.125, %v1141_v23 }
 0x370   :  { %v1697_v29 = vsub.f32 %v1129_v53, %v1143_v26  ;;  %v62_v53 = vand.u32 4294901760, %v52_v48 }
 0x372   :  { %v1145_v33 = vmul.f32 %v1697_v29, %v1697_v29  ;;  %v145_v56 = vsub.f32 %v52_v48, %v62_v53  ;;  %63 = vmatpush1.msra.mxu0 %v62_v53 }
 0x373   :  { %132 = vmatmul.mubr.f32.vlgmr.msra.gmra.mrb[0].mxu0 %v1734_v57  ;;  %143 = vmatprep.subr.mxu0 %v142_v0 }
 0x374   :  { %v1146_v36 = vsel %vm1130_vm3, %v1145_v33, 0.0  ;;  %v146_v58 = vand.u32 4294901760, %v145_v56  ;;  %212 = vmatprep.mubr.f32.mxu0 %v1594_v50 }
 0x375   :  { %1147 = vadd.xlane.f32.xlu1 %v1146_v36 }
 0x376   :  { %v147_v60 = vsub.f32 %v145_v56, %v146_v58 }
 0x378   :  { %v148_v63 = vand.u32 4294901760, %v147_v60 }
 0x379   :  { %1312 = vmax.xlane.f32.xlu1 %v1311_v39  ;;  %v1762_v39 = vld [vmem:[%s1848_s4] sm:$0xf] }
 0x37a   :  { %149 = vmatpush1.msra.mxu0 %v148_v63 }
 0x37b   :  { %214 = vmatmul.mubr.f32.vlgmr.msra.gmra.mrb[0].mxu0 %v1717_v45  ;;  %222 = vmatprep.subr.mxu0 %v139_v9 }
 0x37c   :  { %225 = vmatpush1.msra.mxu0 %v145_v56  ;;  %288 = vmatprep.mubr.f32.mxu0 %v1594_v50 }
 0x37d   :  { %1251 = vmax.xlane.f32.xlu1 %v1250_v42  ;;  %298 = vmatprep.subr.mxu0 %v60_v54  ;;  %v1595_v42 = vmov 8  }
 0x37e   :  { %1507 = vset.pattern.permute.xlu1 %v1595_v42  ;;  %1508 = vset.pattern.permute.xlu0 %v1595_v42 }
 0x383   :  { %291 = vmatmul.mubr.f32.vlgmr.msra.gmra.mrb[0].mxu0 %v1720_v46 }
 0x384   :  { %300 = vmatpush1.msra.mxu0 %v62_v53  ;;  %363 = vmatprep.mubr.f32.mxu0 %v1594_v50 }
 0x385   :  { %376 = vmatprep.subr.mxu0 %v140_v59 }
 0x38b   :  { %367 = vmatmul.mubr.f32.vlgmr.msra.gmra.mrb[0].mxu0 %v1728_v51 }
 0x38c   :  { %380 = vmatpush1.msra.mxu0 %v146_v58  ;;  %443 = vmatprep.mubr.f32.mxu0 %v1594_v50 }
 0x38d   :  { %452 = vmatprep.subr.mxu0 %v60_v54 }
 0x393   :  { %445 = vmatmul.mubr.f32.vlgmr.msra.gmra.mrb[0].mxu0 %v1717_v45 }
 0x394   :  { %454 = vmatpush1.msra.mxu0 %v62_v53  ;;  %517 = vmatprep.mubr.f32.mxu0 %v1594_v50 }
 0x39b   :  { %519 = vmatmul.mubr.f32.vlgmr.msra.gmra.mrb[0].mxu0 %v1717_v45 }
 0x402   :  { %v1148_v1 = vpop.xlane.xlu1 %1147 }
 0x403   :  { %v1149_v2 = vrot.slane %v1148_v1, 4 }
 0x405   :  { %v1150_v3 = vadd.f32 %v1149_v2, %v1148_v1 }
 0x406   :  { %v1313_v4 = vpop.xlane.xlu1 %1312 }
 0x407   :  { %v1151_v5 = vrot.slane %v1150_v3, 2  ;;  %v1314_v7 = vsub.f32 %v1704_v37, %v1313_v4  ;;  %v1315_v8 = vsub.f32 %v1701_v34, %v1313_v4  ;;  %v1165_v34 = vrot.slane %v1682_v49, 2 }
 0x408   :  { %v1171_v37 = vsub.s32 0, %v1647_v6 }
 0x409   :  { %v1316_v11 = vmul.f32 1.442695, %v1314_v7  ;;  %v1318_v13 = vmul.f32 1.442695, %v1315_v8  ;;  %v1152_v14 = vadd.f32 %v1151_v5, %v1150_v3 }
 0x40a   :  { %v1252_v15 = vpop.xlane.xlu1 %1251 }
 0x40b   :  { %1523 = vpow2.f32 %v1316_v11  ;;  %v1253_v16 = vsub.f32 %v1710_v41, %v1252_v15  ;;  %v1254_v12 = vsub.f32 %v1708_v40, %v1252_v15  ;;  %v1153_v17 = vrot.slane %v1152_v14, 1 }
 0x40c   :  { %1525 = vpow2.f32 %v1318_v13 }
 0x40d   :  { %v1255_v18 = vmul.f32 1.442695, %v1253_v16  ;;  %v1257_v19 = vmul.f32 1.442695, %v1254_v12  ;;  %v1154_v10 = vadd.f32 %v1153_v17, %v1152_v14 }
 0x40f   :  { %1527 = vpow2.f32 %v1255_v18  ;;  %1486 = vpush %v1154_v10 }
 0x410   :  { %1529 = vpow2.f32 %v1257_v19 }
 0x415   :  { %v1524_v20 = vpop.eup %1523 }
 0x416   :  { %v1526_v21 = vpop.eup %1525 }
 0x417   :  { %v1320_v22 = vadd.f32 %v1526_v21, %v1524_v20 }
 0x419   :  { %v1528_v23 = vpop.eup %1527  ;;  %1321 = vadd.xlane.f32.xlu0 %v1320_v22 }
 0x41a   :  { %v1530_v24 = vpop.eup %1529 }
 0x41b   :  { %v1259_v25 = vadd.f32 %v1530_v24, %v1528_v23 }
 0x41d   :  { %1260 = vadd.xlane.f32.xlu1 %v1259_v25 }
 0x440   :  { %s1487_s5 = spop %1486 }
 0x441   :  { %v1156_v26 = vstv %s1487_s5 }
 0x442   :  { %v1157_v27 = vmul.f32 0.125, %v1156_v26 }
 0x444   :  { %v1158_v28 = vadd.f32 1e-05, %v1157_v27 }
 0x446   :  { %1531 = vrsqrt.f32 %v1158_v28 }
 0x450   :  { %v1532_v32 = vpop.eup %1531 }
 0x451   :  { %v1160_v33 = vmul.f32 %v1532_v32, %v1697_v29 }
 0x453   :  { %v1164_v35 = vmul.f32 %v1162_v30, %v1160_v33 }
 0x455   :  { %v1167_v36 = vadd.f32 %v1165_v34, %v1164_v35 }
 0x457   :  { %v1168_v38 = vmax.f32 %v1167_v36, 0.0 }
 0x459   :  { %v1172_v40 = vrot.slane %v1168_v38, %v1171_v37 }
 0x45b   :  { %v1173_v29 = vmul.f32 %v1172_v40, %v1762_v39 }
 0x45d   :  { %v1175_v41 = vsel %vm1174_vm6, %v1173_v29, 0.0 }
 0x45e   :  { %1176 = vadd.xlane.f32.xlu0 %v1175_v41 }
 0x46e   :  { %v520_v16 = vpop.f32.mrb[0].mxu0 }
 0x46f   :  { %v522_v12 = vpop.f32.mrb[1].mxu0 }
 0x4a6   :  { %v1322_v43 = vpop.xlane.xlu0 %1321 }
 0x4a7   :  { %1533 = vrcp.f32 %v1322_v43 }
 0x4aa   :  { %v1261_v44 = vpop.xlane.xlu1 %1260 }
 0x4ab   :  { %1535 = vrcp.f32 %v1261_v44 }
 0x4b1   :  { %v1534_v47 = vpop.eup %1533 }
 0x4b2   :  { %v1324_v48 = vmul.f32 %v1534_v47, %v1322_v43 }
 0x4b4   :  { %v1325_v52 = vsub.f32 2.0, %v1324_v48 }
 0x4b5   :  { %v1536_v53 = vpop.eup %1535 }
 0x4b6   :  { %v1326_v54 = vmul.f32 %v1534_v47, %v1325_v52  ;;  %v1263_v55 = vmul.f32 %v1536_v53, %v1261_v44 }
 0x4b8   :  { %v1327_v56 = vmul.f32 %v1524_v20, %v1326_v54  ;;  %v1328_v9 = vmul.f32 %v1526_v21, %v1326_v54  ;;  %v1264_v58 = vsub.f32 2.0, %v1263_v55 }
 0x4ba   :  { %v1265_v59 = vmul.f32 %v1536_v53, %v1264_v58  ;;  %v1331_v60 = vcombine.low %v1327_v56, %v1328_v9 }
 0x4bc   :  { %v1266_v61 = vmul.f32 %v1528_v23, %v1265_v59  ;;  %v1267_v63 = vmul.f32 %v1530_v24, %v1265_v59  ;;  %v1332_v0 = vrot.slane %v1331_v60, 6 }
 0x4be   :  { %v1334_v1 = vmul.f32 %v1332_v0, %v1686_v62  ;;  %v1270_v2 = vcombine.low %v1266_v61, %v1267_v63 }
 0x4c0   :  { %v1336_v3 = vcombine.high %v1334_v1, %v1334_v1  ;;  %v1272_v4 = vmul.f32 %v1270_v2, %v1686_v62  ;;  %v1338_v5 = vsel %vm1112_vm1, %v1334_v1, 0.0 }
 0x4c2   :  { %v1339_v7 = vsel %vm1112_vm1, %v1336_v3, 0.0  ;;  %v1274_v8 = vcombine.high %v1272_v4, %v1272_v4  ;;  %v1276_v13 = vsel %vm1006_vm0, %v1272_v4, 0.0 }
 0x4c3   :  { %v1340_v11 = vadd.f32 %v1339_v7, %v1338_v5 }
 0x4c4   :  { %v1277_v14 = vsel %vm1006_vm0, %v1274_v8, 0.0 }
 0x4c5   :  { %1341 = vadd.xlane.f32.xlu0 %v1340_v11  ;;  %v1278_v15 = vadd.f32 %v1277_v14, %v1276_v13 }
 0x4c7   :  { %1279 = vadd.xlane.f32.xlu1 %v1278_v15 }
 0x4eb   :  { %v1177_v17 = vpop.xlane.xlu0 %1176 }
 0x4ec   :  { %v1178_v18 = vadd.f32 %v1177_v17, %v1762_v39 }
 0x4ee   :  { %1181 = vperm.xlu1 %1507, %v1178_v18  }
 0x552   :  { %v1342_v19 = vpop.xlane.xlu0 %1341 }
 0x553   :  { %v1343_v10 = vmul.f32 %v1342_v19, %v1673_v31 }
 0x554   :  { %v1280_v20 = vpop.xlane.xlu1 %1279 }
 0x555   :  { %v1281_v21 = vmul.f32 %v1280_v20, %v1673_v31  ;;  %v1345_v23 = vrot.slane %v1343_v10, 2 }
 0x557   :  { %v1282_v22 = vsel %vm1053_vm2, %v1281_v21, 0.0  ;;  %v1347_v25 = vsel %vm1053_vm2, %v1345_v23, 0.0 }
 0x558   :  { %v1283_v24 = vrot.slane %v1282_v22, 4  ;;  %v1348_v27 = vrot.slane %v1347_v25, 4 }
 0x55a   :  { %v1284_v26 = vadd.f32 %v1283_v24, %v1282_v22  ;;  %v1349_v32 = vadd.f32 %v1348_v27, %v1347_v25 }
 0x55c   :  { %v1285_v28 = vrot.slane %v1284_v26, 2  ;;  %v1350_v35 = vrot.slane %v1349_v32, 2 }
 0x55e   :  { %v1286_v33 = vadd.f32 %v1285_v28, %v1284_v26  ;;  %v1351_v38 = vadd.f32 %v1350_v35, %v1349_v32 }
 0x560   :  { %v1287_v36 = vrot.slane %v1286_v33, 1  ;;  %v1352_v42 = vrot.slane %v1351_v38, 1 }
 0x562   :  { %v1288_v31 = vadd.f32 %v1287_v36, %v1286_v33  ;;  %v1353_v56 = vadd.f32 %v1352_v42, %v1351_v38 }
 0x564   :  { %v1289_v55 = vadd.f32 %v1288_v31, %v1682_v49 }
 0x566   :  { %v1354_v58 = vadd.f32 %v1353_v56, %v1289_v55 }
 0x568   :  { %v1355_v59 = vsel %vm1130_vm3, %v1354_v58, 0.0 }
 0x56d   :  { %v1182_v40 = vpop.permute.xlu1 %1181 }
 0x56e   :  { %v1779_v29 = vadd.f32 %v1182_v40, %v520_v16  ;;  %v1781_v41 = vadd.f32 %v1182_v40, %v522_v12 }
 0x570   :  { %v1186_v43 = vsel %vm51_vm5, %v1779_v29, 0.0  ;;  %v1187_v44 = vsel %vm51_vm5, %v1781_v41, 0.0  ;;  %v1199_v47 = vmul.f32 %v1779_v29, %v1779_v29  ;;  %v1200_v48 = vmul.f32 %v1781_v41, %v1781_v41 }
 0x571   :  { %v1188_v52 = vadd.f32 %v1187_v44, %v1186_v43 }
 0x572   :  { %v1201_v53 = vsel %vm51_vm5, %v1199_v47, 0.0  ;;  %v1202_v54 = vsel %vm51_vm5, %v1200_v48, 0.0 }
 0x573   :  { %1189 = vadd.xlane.f32.xlu0 %v1188_v52  ;;  %v1203_v9 = vadd.f32 %v1202_v54, %v1201_v53  ;;  %v46_v52 = vcombine.high %v1686_v62, %v1686_v62  ;;  %v56_v53 = vsel %vm51_vm5, %v1686_v62, 0 }
 0x574   :  { %v527_v54 = vand.u32 4294901760, %v56_v53 }
 0x575   :  { %v58_v55 = vsel %vm51_vm5, %v46_v52, 0 }
 0x576   :  { %v525_v56 = vand.u32 4294901760, %v58_v55 }
 0x577   :  { %1204 = vadd.xlane.f32.xlu0 %v1203_v9 }
 0x578   :  { %526 = vmatprep.subr.mxu1 %v525_v56 }
 0x579   :  { %528 = vmatpush1.msra.mxu1 %v527_v54 }
 0x57a   :  { %597 = vmatmul.mubr.f32.vlgmr.msra.gmra.mrb[0].mxu1 %v1734_v57 }
 0x57b   :  { %1356 = vadd.xlane.f32.xlu0 %v1355_v59  ;;  %677 = vmatprep.mubr.f32.mxu1 %v1594_v50 }
 0x600   :  { %v1190_v60 = vpop.xlane.xlu0 %1189 }
 0x601   :  { %v1191_v61 = vrot.slane %v1190_v60, 4 }
 0x603   :  { %v1192_v63 = vadd.f32 %v1191_v61, %v1190_v60 }
 0x604   :  { %v1205_v0 = vpop.xlane.xlu0 %1204 }
 0x605   :  { %v1193_v1 = vrot.slane %v1192_v63, 2  ;;  %v1206_v2 = vrot.slane %v1205_v0, 4 }
 0x607   :  { %v1207_v3 = vadd.f32 %v1206_v2, %v1205_v0  ;;  %v1194_v4 = vadd.f32 %v1193_v1, %v1192_v63 }
 0x608   :  { %v1357_v5 = vpop.xlane.xlu0 %1356 }
 0x609   :  { %v1208_v7 = vrot.slane %v1207_v3, 2  ;;  %v1358_v8 = vrot.slane %v1357_v5, 4  ;;  %v1195_v11 = vrot.slane %v1194_v4, 1 }
 0x60b   :  { %v1359_v13 = vadd.f32 %v1358_v8, %v1357_v5  ;;  %v1196_v14 = vadd.f32 %v1195_v11, %v1194_v4  ;;  %v1209_v15 = vadd.f32 %v1208_v7, %v1207_v3 }
 0x60d   :  { %v1360_v16 = vrot.slane %v1359_v13, 2  ;;  %1488 = vpush %v1196_v14  ;;  %v1210_v12 = vrot.slane %v1209_v15, 1 }
 0x60f   :  { %v1211_v17 = vadd.f32 %v1210_v12, %v1209_v15  ;;  %v1361_v18 = vadd.f32 %v1360_v16, %v1359_v13 }
 0x611   :  { %1490 = vpush %v1211_v17  ;;  %v1362_v19 = vrot.slane %v1361_v18, 1 }
 0x613   :  { %v1363_v10 = vadd.f32 %v1362_v19, %v1361_v18 }
 0x615   :  { %1492 = vpush %v1363_v10 }
 0x63e   :  { %s1489_s4 = spop %1488 }
 0x63f   :  { %v1198_v20 = vstv %s1489_s4 }
 0x640   :  { %v1214_v21 = vmul.f32 0.0009765625, %v1198_v20 }
 0x642   :  { %s1491_s16 = spop %1490  ;;  %v1216_v24 = vmul.f32 %v1214_v21, %v1214_v21  ;;  %v1219_v38 = vsub.f32 %v1779_v29, %v1214_v21  ;;  %v1220_v40 = vsub.f32 %v1781_v41, %v1214_v21  ;;  %v610_v29 = vsub.f32 %v56_v53, %v527_v54 }
 0x643   :  { %v1213_v22 = vstv %s1491_s16  ;;  %v604_v41 = vsub.f32 %v58_v55, %v525_v56 }
 0x644   :  { %v1215_v23 = vmul.f32 0.0009765625, %v1213_v22  ;;  %v611_v9 = vand.u32 4294901760, %v610_v29 }
 0x646   :  { %v1217_v25 = vsub.f32 %v1215_v23, %v1216_v24  ;;  %s1493_s17 = spop %1492  ;;  %v612_v59 = vsub.f32 %v610_v29, %v611_v9 }
 0x647   :  { %v1365_v26 = vstv %s1493_s17 }
 0x648   :  { %v1218_v27 = vmax.f32 %v1217_v25, 0.0  ;;  %v1366_v28 = vmul.f32 0.125, %v1365_v26  ;;  %v613_v61 = vand.u32 4294901760, %v612_v59 }
 0x64a   :  { %v1221_v32 = vadd.f32 1e-05, %v1218_v27  ;;  %v1795_v33 = vsub.f32 %v1354_v58, %v1366_v28  ;;  %v605_v58 = vand.u32 4294901760, %v604_v41 }
 0x64c   :  { %1537 = vrsqrt.f32 %v1221_v32  ;;  %v1368_v35 = vmul.f32 %v1795_v33, %v1795_v33  ;;  %v606_v60 = vsub.f32 %v604_v41, %v605_v58 }
 0x64e   :  { %v1369_v36 = vsel %vm1130_vm3, %v1368_v35, 0.0  ;;  %v607_v63 = vand.u32 4294901760, %v606_v60 }
 0x64f   :  { %1370 = vadd.xlane.f32.xlu0 %v1369_v36 }
 0x650   :  { %608 = vmatprep.subr.mxu1 %v607_v63 }
 0x651   :  { %614 = vmatpush1.msra.mxu1 %v613_v61 }
 0x652   :  { %679 = vmatmul.mubr.f32.vlgmr.msra.gmra.mrb[0].mxu1 %v1717_v45  ;;  %687 = vmatprep.subr.mxu1 %v604_v41 }
 0x653   :  { %690 = vmatpush1.msra.mxu1 %v610_v29  ;;  %753 = vmatprep.mubr.f32.mxu1 %v1594_v50 }
 0x654   :  { %763 = vmatprep.subr.mxu1 %v525_v56 }
 0x656   :  { %v1538_v31 = vpop.eup %1537 }
 0x657   :  { %v1223_v42 = vmul.f32 %v1538_v31, %v1219_v38  ;;  %v1224_v43 = vmul.f32 %v1538_v31, %v1220_v40 }
 0x659   :  { %v1225_v44 = vmax.f32 %v1223_v42, 0.0  ;;  %v1226_v47 = vmax.f32 %v1224_v43, 0.0 }
 0x65a   :  { %756 = vmatmul.mubr.f32.vlgmr.msra.gmra.mrb[0].mxu1 %v1720_v46 }
 0x65b   :  { %v1229_v48 = vcombine.low %v1225_v44, %v1226_v47  ;;  %765 = vmatpush1.msra.mxu1 %v527_v54  ;;  %828 = vmatprep.mubr.f32.mxu1 %v1594_v50 }
 0x65c   :  { %841 = vmatprep.subr.mxu1 %v605_v58 }
 0x65d   :  { %1231 = vst [vmem:[#allocation5] sm:$0xff] %v1229_v48 }
 0x662   :  { %832 = vmatmul.mubr.f32.vlgmr.msra.gmra.mrb[0].mxu1 %v1728_v51 }
 0x663   :  { %845 = vmatpush1.msra.mxu1 %v611_v9  ;;  %908 = vmatprep.mubr.f32.mxu1 %v1594_v50 }
 0x664   :  { %917 = vmatprep.subr.mxu1 %v525_v56 }
 0x66a   :  { %910 = vmatmul.mubr.f32.vlgmr.msra.gmra.mrb[0].mxu1 %v1717_v45 }
 0x66b   :  { %919 = vmatpush1.msra.mxu1 %v527_v54  ;;  %982 = vmatprep.mubr.f32.mxu1 %v1594_v50 }
 0x672   :  { %984 = vmatmul.mubr.f32.vlgmr.msra.gmra.mrb[0].mxu1 %v1717_v45 }
 0x6dc   :  { %v1371_v62 = vpop.xlane.xlu0 %1370 }
 0x6dd   :  { %v1372_v57 = vrot.slane %v1371_v62, 4 }
 0x6df   :  { %v1373_v46 = vadd.f32 %v1372_v57, %v1371_v62 }
 0x6e1   :  { %v1374_v0 = vrot.slane %v1373_v46, 2 }
 0x6e3   :  { %v1375_v1 = vadd.f32 %v1374_v0, %v1373_v46 }
 0x6e5   :  { %v1376_v2 = vrot.slane %v1375_v1, 1 }
 0x6e7   :  { %v1377_v3 = vadd.f32 %v1376_v2, %v1375_v1 }
 0x6e9   :  { %1494 = vpush %v1377_v3 }
 0x71a   :  { %s1495_s18 = spop %1494 }
 0x71b   :  { %v1379_v51 = vstv %s1495_s18 }
 0x71c   :  { %v1380_v4 = vmul.f32 0.125, %v1379_v51 }
 0x71e   :  { %v1381_v5 = vadd.f32 1e-05, %v1380_v4 }
 0x720   :  { %1539 = vrsqrt.f32 %v1381_v5 }
 0x72a   :  { %v1540_v7 = vpop.eup %1539 }
 0x72b   :  { %v1383_v8 = vmul.f32 %v1540_v7, %v1795_v33 }
 0x72d   :  { %v1384_v50 = vmul.f32 %v1383_v8, %v1162_v30 }
 0x72f   :  { %v1385_v45 = vadd.f32 %v1384_v50, %v1165_v34 }
 0x731   :  { %v1386_v11 = vmax.f32 %v1385_v45, 0.0 }
 0x733   :  { %v1390_v13 = vrot.slane %v1386_v11, %v1171_v37 }
 0x735   :  { %v1391_v14 = vmul.f32 %v1390_v13, %v1762_v39 }
 0x737   :  { %v1392_v15 = vsel %vm1174_vm6, %v1391_v14, 0.0 }
 0x738   :  { %1393 = vadd.xlane.f32.xlu1 %v1392_v15 }
 0x745   :  { %v985_v16 = vpop.f32.mrb[0].mxu1 }
 0x746   :  { %v987_v12 = vpop.f32.mrb[1].mxu1 }
 0x7c5   :  { %v1394_v17 = vpop.xlane.xlu1 %1393 }
 0x7c6   :  { %v1395_v18 = vadd.f32 %v1394_v17, %v1762_v39 }
 0x7c8   :  { %1398 = vperm.xlu0 %1508, %v1395_v18  }
 0x847   :  { %v1399_v19 = vpop.permute.xlu0 %1398 }
 0x848   :  { %v1401_v30 = vadd.f32 %v1399_v19, %v985_v16  ;;  %v1402_v10 = vadd.f32 %v1399_v19, %v987_v12 }
 0x84a   :  { %v1403_v49 = vsel %vm51_vm5, %v1401_v30, 0.0  ;;  %v1404_v34 = vsel %vm51_vm5, %v1402_v10, 0.0  ;;  %v1416_v6 = vmul.f32 %v1401_v30, %v1401_v30  ;;  %v1417_v37 = vmul.f32 %v1402_v10, %v1402_v10 }
 0x84b   :  { %v1405_v20 = vadd.f32 %v1404_v34, %v1403_v49 }
 0x84c   :  { %v1418_v21 = vsel %vm51_vm5, %v1416_v6, 0.0  ;;  %v1419_v22 = vsel %vm51_vm5, %v1417_v37, 0.0 }
 0x84d   :  { %1406 = vadd.xlane.f32.xlu1 %v1405_v20  ;;  %v1420_v23 = vadd.f32 %v1419_v22, %v1418_v21 }
 0x851   :  { %1421 = vadd.xlane.f32.xlu1 %v1420_v23 }
 0x8da   :  { %v1407_v24 = vpop.xlane.xlu1 %1406 }
 0x8db   :  { %v1408_v39 = vrot.slane %v1407_v24, 4 }
 0x8dd   :  { %v1409_v25 = vadd.f32 %v1408_v39, %v1407_v24 }
 0x8de   :  { %v1422_v26 = vpop.xlane.xlu1 %1421 }
 0x8df   :  { %v1410_v27 = vrot.slane %v1409_v25, 2  ;;  %v1423_v28 = vrot.slane %v1422_v26, 4 }
 0x8e1   :  { %v1424_v32 = vadd.f32 %v1423_v28, %v1422_v26  ;;  %v1411_v33 = vadd.f32 %v1410_v27, %v1409_v25 }
 0x8e3   :  { %v1425_v35 = vrot.slane %v1424_v32, 2  ;;  %v1412_v36 = vrot.slane %v1411_v33, 1 }
 0x8e5   :  { %v1426_v38 = vadd.f32 %v1425_v35, %v1424_v32  ;;  %v1413_v40 = vadd.f32 %v1412_v36, %v1411_v33 }
 0x8e7   :  { %1496 = vpush %v1413_v40  ;;  %v1427_v31 = vrot.slane %v1426_v38, 1 }
 0x8e9   :  { %v1428_v42 = vadd.f32 %v1427_v31, %v1426_v38 }
 0x8eb   :  { %1498 = vpush %v1428_v42 }
 0x918   :  { %s1497_s19 = spop %1496 }
 0x919   :  { %v1415_v43 = vstv %s1497_s19 }
 0x91a   :  { %v1431_v44 = vmul.f32 0.0009765625, %v1415_v43 }
 0x91c   :  { %s1499_s20 = spop %1498  ;;  %v1433_v52 = vmul.f32 %v1431_v44, %v1431_v44  ;;  %v1436_v56 = vsub.f32 %v1401_v30, %v1431_v44  ;;  %v1437_v29 = vsub.f32 %v1402_v10, %v1431_v44 }
 0x91d   :  { %v1430_v47 = vstv %s1499_s20 }
 0x91e   :  { %v1432_v48 = vmul.f32 0.0009765625, %v1430_v47 }
 0x920   :  { %v1434_v53 = vsub.f32 %v1432_v48, %v1433_v52 }
 0x922   :  { %v1435_v54 = vmax.f32 %v1434_v53, 0.0 }
 0x924   :  { %v1438_v55 = vadd.f32 1e-05, %v1435_v54 }
 0x926   :  { %1541 = vrsqrt.f32 %v1438_v55 }
 0x930   :  { %v1542_v41 = vpop.eup %1541 }
 0x931   :  { %v1440_v9 = vmul.f32 %v1542_v41, %v1436_v56  ;;  %v1441_v58 = vmul.f32 %v1542_v41, %v1437_v29 }
 0x933   :  { %v1442_v59 = vmax.f32 %v1440_v9, 0.0  ;;  %v1443_v60 = vmax.f32 %v1441_v58, 0.0 }
 0x935   :  { %v1446_v61 = vcombine.low %v1442_v59, %v1443_v60 }
 0x937   :  { %1448 = vst [vmem:[#allocation5 + $0x8] sm:$0xff] %v1446_v61 }
 0x938   :  { %1576 = shalt.err (!%p1573_p12)
}
 0x939   :  { %s1577_s26 = scalar_lea.hbm %s1850_s6, 256 }
 0x93a   :  { %p1578_p13 = scmp.ne.s32.totalorder %s1850_s6, %s1577_s26  ;;  %p1581_p0 = scmp.lt.u32.totalorder %s1577_s26, %s1850_s6 }
 0x93c   :  { %p1583_p1 = pnand %p1581_p0, %p1578_p13 }
 0x93e   :  { %1586 = shalt.err (!%p1583_p1)
}
 0x93f   :  { %1458 = dma.vmem_to_hbm [thread:$0]  %s1456_s22, 256, %s1850_s6, [#allocation4]  }
 0x940   :  { %1589 = dma.done.wait [#allocation4], 256  }
 0x941   :  { %1590 = vsyncadd [#allocation4], 4294967040 }
 0x942   :  { %1462 = vsyncpa [#allocation3], 1 }
 0x943   :  { %1463 = vsyncpa [#allocation4], 1 }

// kernel: tpu_custom_call.1
= control target key start
LH: loop header
LB: loop body
LE: loop exit
PB: predicated region body
PF: predicated region fallthrough
CT: control target
= control target key end

     0   :  { %11 = vsyncpa [#allocation3], 0  ;;  %s1844_s0 = inlined_call_operand.hbm [shape: f32[1,4,512], index: 0, kind: input, shape index: {}]   ;;  %s1845_s1 = inlined_call_operand.vmem [shape: f32[2,1], index: 1, kind: input, shape index: {}]   ;;  %s1846_s2 = inlined_call_operand.vmem [shape: f32[3,8], index: 2, kind: input, shape index: {}]   ;;  %s1847_s3 = inlined_call_operand.vmem [shape: f32[4,8], index: 3, kind: input, shape index: {}]   ;;  %s1848_s4 = inlined_call_operand.vmem [shape: f32[4,9], index: 4, kind: input, shape index: {}]   ;;  %s1849_s5 = inlined_call_operand.vmem [shape: f32[4,4], index: 5, kind: input, shape index: {}]   ;;  %s1850_s6 = inlined_call_operand.hbm [shape: f32[1,4,512], index: 6, kind: output, shape index: {}]  }
   0x1   :  { %12 = vsyncpa [#allocation4], 0  ;;  %s1591_s21 = smov [#allocation2]   ;;  %s1543_s25 = scalar_lea.hbm %s1844_s0, 256 }
   0x2   :  { %s19_s22 = sshll.u32 %s1591_s21, 4  ;;  %p1544_p0 = scmp.ne.s32.totalorder %s1844_s0, %s1543_s25  ;;  %s20_s22 = int_to_ptr.vmem [resolvable:$true] %s19_s22 }
   0x3   :  { %p1547_p1 = scmp.lt.u32.totalorder %s1543_s25, %s1844_s0 }
   0x5   :  { %p1549_p2 = pnand %p1547_p1, %p1544_p0 }
   0x7   :  { %1552 = shalt.err (!%p1549_p2)
}
   0x8   :  { %s1553_s30 = scalar_lea.vmem %s20_s22, 256  ;;  %p1558_p4 = scmp.lt.s32.totalorder %s20_s22, %s20_s22 }
   0x9   :  { %p1554_p3 = scmp.ne.s32.totalorder %s20_s22, %s1553_s30  ;;  %p1559_p5 = scmp.lt.s32.totalorder %s1553_s30, %s1553_s30 }
   0xb   :  { %p1560_p6 = por %p1559_p5, %p1558_p4 }
   0xd   :  { %p1561_p7 = pnand %p1560_p6, %p1554_p3 }
   0xf   :  { %1564 = shalt.err (!%p1561_p7)
}
  0x10   :  { %22 = dma.hbm_to_vmem [thread:$0]  %s1844_s0, 256, %s20_s22, [#allocation3]  }
  0x11   :  { %1587 = dma.done.wait [#allocation3], 256  }
  0x12   :  { %1588 = vsyncadd [#allocation3], 4294967040  ;;  %v1592_v0 = vmov 0   ;;  %v38_v1 = vld [vmem:[%s1845_s1] sm:$0x3]  ;;  %v997_v4 = vlaneseq  ;;  %vm1006_vm0 = vcmask 1041408  }
  0x13   :  { %1506 = vset.pattern.permute.xlu0 %v1592_v0  ;;  %v1593_v2 = vmov 839922192   ;;  %v1650_v9 = vld [vmem:[#allocation2] sm:$0xff]  ;;  %vm1112_vm1 = vcmask 1043458   ;;  %vm1053_vm2 = vcmask 58368   ;;  %vm1130_vm3 = vcmask 57344  }
  0x14   :  { %992 = vperm.xlu0 %1506, %v38_v1   ;;  %v995_v3 = vunpack.c.l.s4 %v1593_v2  ;;  %v1647_v6 = vshrl.u32 %v997_v4, 7  ;;  %vm47_vm4 = vcmask 31744   ;;  %vm51_vm5 = vcmask 1043456   ;;  %s1596_s21 = smov [#allocation5]  }
  0x15   :  { %vm1174_vm6 = vcmask 60416   ;;  %s1455_s22 = sshll.u32 %s1596_s21, 4  ;;  %s1456_s22 = int_to_ptr.vmem [resolvable:$true] %s1455_s22 }
  0x16   :  { %v996_v5 = vunpack.c.0.s8 %v995_v3  ;;  %s1565_s23 = scalar_lea.vmem %s1456_s22, 256  ;;  %p1570_p9 = scmp.lt.s32.totalorder %s1456_s22, %s1456_s22 }
  0x17   :  { %p1566_p8 = scmp.ne.s32.totalorder %s1456_s22, %s1565_s23  ;;  %p1571_p10 = scmp.lt.s32.totalorder %s1565_s23, %s1565_s23 }
  0x18   :  { %v999_v7 = vsub.s32 %v996_v5, %v1647_v6 }
  0x19   :  { %p1572_p11 = por %p1571_p10, %p1570_p9 }
  0x1b   :  { %p1573_p12 = pnand %p1572_p11, %p1566_p8 }
  0x93   :  { %v993_v8 = vpop.permute.xlu0 %992 }
  0x94   :  { %v1652_v10 = vrot.slane %v993_v8, %v999_v7 }
  0x96   :  { %v1002_v11 = vmul.f32 %v1652_v10, %v1650_v9  ;;  %v1062_v12 = vrot.slane %v1652_v10, 6 }
  0x98   :  { %v1004_v13 = vcombine.high %v1002_v11, %v1002_v11  ;;  %v1064_v14 = vmul.f32 %v1062_v12, %v1650_v9  ;;  %v1007_v15 = vsel %vm1006_vm0, %v1002_v11, 0.0 }
  0x99   :  { %v1008_v18 = vrot.slane %v1007_v15, 4 }
  0x9a   :  { %v1066_v16 = vcombine.high %v1064_v14, %v1064_v14  ;;  %v1067_v17 = vrot.slane %v1064_v14, 2  ;;  %v1014_v19 = vsel %vm1006_vm0, %v1004_v13, 0.0 }
  0x9b   :  { %v1015_v20 = vrot.slane %v1014_v19, 4  ;;  %v1009_v22 = vadd.f32 %v1008_v18, %v1007_v15 }
  0x9c   :  { %v1068_v21 = vrot.slane %v1066_v16, 2  ;;  %v1071_v23 = vsel %vm1006_vm0, %v1067_v17, 0.0 }
  0x9d   :  { %v1016_v24 = vadd.f32 %v1015_v20, %v1014_v19  ;;  %v1072_v25 = vrot.slane %v1071_v23, 4  ;;  %v1010_v26 = vrot.slane %v1009_v22, 2 }
  0x9e   :  { %v1078_v27 = vsel %vm1006_vm0, %v1068_v21, 0.0 }
  0x9f   :  { %v1017_v28 = vrot.slane %v1016_v24, 2  ;;  %v1073_v29 = vadd.f32 %v1072_v25, %v1071_v23  ;;  %v1079_v30 = vrot.slane %v1078_v27, 4  ;;  %v1011_v31 = vadd.f32 %v1010_v26, %v1009_v22 }
  0xa1   :  { %v1018_v32 = vadd.f32 %v1017_v28, %v1016_v24  ;;  %v1074_v33 = vrot.slane %v1073_v29, 2  ;;  %v1080_v34 = vadd.f32 %v1079_v30, %v1078_v27  ;;  %v1012_v35 = vrot.slane %v1011_v31, 1 }
  0xa3   :  { %v1019_v36 = vrot.slane %v1018_v32, 1  ;;  %v1075_v37 = vadd.f32 %v1074_v33, %v1073_v29  ;;  %v1081_v38 = vrot.slane %v1080_v34, 2  ;;  %v1013_v39 = vadd.f32 %v1012_v35, %v1011_v31  ;;  %v1673_v31 = vld [vmem:[%s1847_s3] sm:$0xf] }
  0xa5   :  { %v1020_v40 = vadd.f32 %v1019_v36, %v1018_v32  ;;  %v1076_v41 = vrot.slane %v1075_v37, 1  ;;  %v1082_v42 = vadd.f32 %v1081_v38, %v1080_v34 }
  0xa7   :  { %v1021_v43 = vmax.f32 %v1013_v39, %v1020_v40  ;;  %v1083_v44 = vrot.slane %v1082_v42, 1  ;;  %v1077_v45 = vadd.f32 %v1076_v41, %v1075_v37 }
  0xa9   :  { %1022 = vmax.xlane.f32.xlu1 %v1021_v43  ;;  %v1084_v46 = vadd.f32 %v1083_v44, %v1082_v42 }
  0xab   :  { %v1085_v47 = vmax.f32 %v1077_v45, %v1084_v46 }
  0xad   :  { %1086 = vmax.xlane.f32.xlu0 %v1085_v47 }
 0x136   :  { %v1023_v48 = vpop.xlane.xlu1 %1022 }
 0x137   :  { %v1024_v49 = vsub.f32 %v1013_v39, %v1023_v48  ;;  %v1025_v50 = vsub.f32 %v1020_v40, %v1023_v48 }
 0x139   :  { %v1026_v54 = vmul.f32 1.442695, %v1024_v49  ;;  %v1028_v57 = vmul.f32 1.442695, %v1025_v50  ;;  %v1682_v49 = vld [vmem:[%s1846_s2] sm:$0x7] }
 0x13a   :  { %v1087_v51 = vpop.xlane.xlu0 %1086 }
 0x13b   :  { %v1088_v52 = vsub.f32 %v1077_v45, %v1087_v51  ;;  %v1089_v53 = vsub.f32 %v1084_v46, %v1087_v51 }
 0x13d   :  { %v1090_v55 = vmul.f32 1.442695, %v1088_v52  ;;  %v1092_v56 = vmul.f32 1.442695, %v1089_v53 }
 0x13f   :  { %1511 = vpow2.f32 %v1090_v55 }
 0x140   :  { %1513 = vpow2.f32 %v1092_v56 }
 0x141   :  { %1515 = vpow2.f32 %v1026_v54 }
 0x142   :  { %1517 = vpow2.f32 %v1028_v57 }
 0x149   :  { %v1512_v58 = vpop.eup %1511 }
 0x14a   :  { %v1514_v59 = vpop.eup %1513 }
 0x14b   :  { %v1516_v60 = vpop.eup %1515  ;;  %v1094_v61 = vadd.f32 %v1514_v59, %v1512_v58 }
 0x14c   :  { %v1518_v62 = vpop.eup %1517 }
 0x14d   :  { %1095 = vadd.xlane.f32.xlu1 %v1094_v61  ;;  %v1030_v63 = vadd.f32 %v1518_v62, %v1516_v60 }
 0x151   :  { %1031 = vadd.xlane.f32.xlu1 %v1030_v63 }
 0x1da   :  { %v1096_v0 = vpop.xlane.xlu1 %1095 }
 0x1db   :  { %1519 = vrcp.f32 %v1096_v0 }
 0x1de   :  { %v1032_v1 = vpop.xlane.xlu1 %1031 }
 0x1df   :  { %1521 = vrcp.f32 %v1032_v1 }
 0x1e5   :  { %v1520_v2 = vpop.eup %1519 }
 0x1e6   :  { %v1098_v3 = vmul.f32 %v1520_v2, %v1096_v0 }
 0x1e8   :  { %v1099_v4 = vsub.f32 2.0, %v1098_v3 }
 0x1e9   :  { %v1522_v5 = vpop.eup %1521 }
 0x1ea   :  { %v1100_v7 = vmul.f32 %v1520_v2, %v1099_v4  ;;  %v1034_v8 = vmul.f32 %v1522_v5, %v1032_v1 }
 0x1ec   :  { %v1101_v11 = vmul.f32 %v1512_v58, %v1100_v7  ;;  %v1102_v13 = vmul.f32 %v1514_v59, %v1100_v7  ;;  %v1035_v14 = vsub.f32 2.0, %v1034_v8 }
 0x1ee   :  { %v1036_v15 = vmul.f32 %v1522_v5, %v1035_v14  ;;  %v1105_v16 = vcombine.low %v1101_v11, %v1102_v13 }
 0x1f0   :  { %v1037_v17 = vmul.f32 %v1516_v60, %v1036_v15  ;;  %v1038_v18 = vmul.f32 %v1518_v62, %v1036_v15  ;;  %v1106_v19 = vrot.slane %v1105_v16, 6  ;;  %v1686_v62 = vld [vmem:[#allocation2 + $0x8] sm:$0xff] }
 0x1f1   :  { %v1290_v63 = vmul.f32 %v1062_v12, %v1686_v62  ;;  %v1232_v1 = vmul.f32 %v1652_v10, %v1686_v62 }
 0x1f2   :  { %v1041_v20 = vcombine.low %v1037_v17, %v1038_v18  ;;  %v1108_v21 = vmul.f32 %v1106_v19, %v1650_v9 }
 0x1f3   :  { %v1292_v0 = vcombine.high %v1290_v63, %v1290_v63  ;;  %v1293_v3 = vrot.slane %v1290_v63, 2  ;;  %v1234_v4 = vcombine.high %v1232_v1, %v1232_v1  ;;  %v1236_v14 = vsel %vm1006_vm0, %v1232_v1, 0.0 }
 0x1f4   :  { %v1043_v22 = vmul.f32 %v1041_v20, %v1650_v9  ;;  %v1110_v24 = vcombine.high %v1108_v21, %v1108_v21  ;;  %v1113_v29 = vsel %vm1112_vm1, %v1108_v21, 0.0  ;;  %v1237_v12 = vrot.slane %v1236_v14, 4 }
 0x1f5   :  { %v1294_v2 = vrot.slane %v1292_v0, 2  ;;  %v1297_v7 = vsel %vm1006_vm0, %v1293_v3, 0.0  ;;  %v1243_v11 = vsel %vm1006_vm0, %v1234_v4, 0.0 }
 0x1f6   :  { %v1045_v23 = vcombine.high %v1043_v22, %v1043_v22  ;;  %v1047_v25 = vsel %vm1006_vm0, %v1043_v22, 0.0  ;;  %v1114_v28 = vsel %vm1112_vm1, %v1110_v24, 0.0  ;;  %v1298_v13 = vrot.slane %v1297_v7, 4 }
 0x1f7   :  { %v1115_v30 = vadd.f32 %v1114_v28, %v1113_v29  ;;  %v1304_v5 = vsel %vm1006_vm0, %v1294_v2, 0.0  ;;  %v1244_v16 = vrot.slane %v1243_v11, 4  ;;  %v1238_v20 = vadd.f32 %v1237_v12, %v1236_v14 }
 0x1f8   :  { %v1048_v26 = vsel %vm1006_vm0, %v1045_v23, 0.0  ;;  %v1305_v8 = vrot.slane %v1304_v5, 4  ;;  %v1299_v17 = vadd.f32 %v1298_v13, %v1297_v7 }
 0x1f9   :  { %v1049_v27 = vadd.f32 %v1048_v26, %v1047_v25  ;;  %v1245_v19 = vadd.f32 %v1244_v16, %v1243_v11  ;;  %v1239_v25 = vrot.slane %v1238_v20, 2 }
 0x1fa   :  { %v1306_v15 = vadd.f32 %v1305_v8, %v1304_v5  ;;  %v1300_v10 = vrot.slane %v1299_v17, 2 }
 0x1fb   :  { %1050 = vadd.xlane.f32.xlu1 %v1049_v27  ;;  %v1246_v22 = vrot.slane %v1245_v19, 2 }
 0x1fc   :  { %v1307_v18 = vrot.slane %v1306_v15, 2  ;;  %v1301_v24 = vadd.f32 %v1300_v10, %v1299_v17 }
 0x1fd   :  { %v1247_v28 = vadd.f32 %v1246_v22, %v1245_v19 }
 0x1fe   :  { %v1308_v21 = vadd.f32 %v1307_v18, %v1306_v15 }
 0x1ff   :  { %1116 = vadd.xlane.f32.xlu1 %v1115_v30  ;;  %v1302_v30 = vrot.slane %v1301_v24, 1 }
 0x200   :  { %v1309_v27 = vrot.slane %v1308_v21, 1 }
 0x288   :  { %v1051_v32 = vpop.xlane.xlu1 %1050 }
 0x289   :  { %v1052_v33 = vmul.f32 %v1051_v32, %v1673_v31  ;;  %v1240_v32 = vadd.f32 %v1239_v25, %v1238_v20 }
 0x28b   :  { %v1054_v34 = vsel %vm1053_vm2, %v1052_v33, 0.0 }
 0x28c   :  { %v1055_v35 = vrot.slane %v1054_v34, 4  ;;  %v1117_v36 = vpop.xlane.xlu1 %1116 }
 0x28d   :  { %v1118_v37 = vmul.f32 %v1117_v36, %v1673_v31 }
 0x28e   :  { %v1056_v38 = vadd.f32 %v1055_v35, %v1054_v34  ;;  %v1701_v34 = vadd.f32 %v1309_v27, %v1308_v21  ;;  %v1248_v35 = vrot.slane %v1247_v28, 1 }
 0x28f   :  { %v1120_v39 = vrot.slane %v1118_v37, 2  ;;  %v1704_v37 = vadd.f32 %v1302_v30, %v1301_v24  ;;  %v1162_v30 = vrot.slane %v1682_v49, 1 }
 0x290   :  { %v1057_v40 = vrot.slane %v1056_v38, 2 }
 0x291   :  { %v1122_v41 = vsel %vm1053_vm2, %v1120_v39, 0.0  ;;  %v1311_v39 = vmax.f32 %v1704_v37, %v1701_v34 }
 0x292   :  { %v1058_v42 = vadd.f32 %v1057_v40, %v1056_v38  ;;  %v1123_v43 = vrot.slane %v1122_v41, 4  ;;  %v1241_v38 = vrot.slane %v1240_v32, 1  ;;  %v1708_v40 = vadd.f32 %v1248_v35, %v1247_v28 }
 0x294   :  { %v1059_v44 = vrot.slane %v1058_v42, 1  ;;  %v1124_v45 = vadd.f32 %v1123_v43, %v1122_v41  ;;  %v1710_v41 = vadd.f32 %v1241_v38, %v1240_v32  ;;  %v42_v43 = vld [vmem:[%s1849_s5] sm:$0xf] }
 0x296   :  { %v1125_v46 = vrot.slane %v1124_v45, 2  ;;  %v1060_v48 = vadd.f32 %v1059_v44, %v1058_v42  ;;  %v1250_v42 = vmax.f32 %v1710_v41, %v1708_v40  ;;  %v49_v44 = vsel %vm47_vm4, %v42_v43, 0 }
 0x298   :  { %v1126_v47 = vadd.f32 %v1125_v46, %v1124_v45  ;;  %v1061_v51 = vadd.f32 %v1060_v48, %v1682_v49  ;;  %v1717_v45 = vand.u32 4294901760, %v49_v44  ;;  %v52_v48 = vsel %vm51_vm5, %v1650_v9, 0 }
 0x29a   :  { %v1127_v50 = vrot.slane %v1126_v47, 1  ;;  %v1720_v46 = vsub.f32 %v49_v44, %v1717_v45 }
 0x29c   :  { %v1128_v52 = vadd.f32 %v1127_v50, %v1126_v47  ;;  %v45_v47 = vcombine.high %v1650_v9, %v1650_v9  ;;  %v1594_v50 = vmov 0.0  }
 0x29d   :  { %126 = vmatprep.mubr.f32.mxu0 %v1594_v50  ;;  %591 = vmatprep.mubr.f32.mxu1 %v1594_v50 }
 0x29e   :  { %v1129_v53 = vadd.f32 %v1128_v52, %v1061_v51  ;;  %v1728_v51 = vand.u32 4294901760, %v1720_v46  ;;  %v54_v52 = vsel %vm51_vm5, %v45_v47, 0 }
 0x2a0   :  { %v1131_v54 = vsel %vm1130_vm3, %v1129_v53, 0.0 }
 0x2a1   :  { %1132 = vadd.xlane.f32.xlu1 %v1131_v54  ;;  %v60_v54 = vand.u32 4294901760, %v54_v52 }
 0x2a3   :  { %61 = vmatprep.subr.mxu0 %v60_v54  ;;  %v139_v9 = vsub.f32 %v54_v52, %v60_v54 }
 0x32e   :  { %v1133_v55 = vpop.xlane.xlu1 %1132 }
 0x32f   :  { %v1134_v56 = vrot.slane %v1133_v55, 4 }
 0x331   :  { %v1135_v57 = vadd.f32 %v1134_v56, %v1133_v55  ;;  %v130_v55 = vsub.f32 %v1720_v46, %v1728_v51 }
 0x333   :  { %v1136_v58 = vrot.slane %v1135_v57, 2 }
 0x335   :  { %v1137_v59 = vadd.f32 %v1136_v58, %v1135_v57  ;;  %v1734_v57 = vand.u32 4294901760, %v130_v55 }
 0x337   :  { %v1138_v60 = vrot.slane %v1137_v59, 1 }
 0x339   :  { %v1139_v61 = vadd.f32 %v1138_v60, %v1137_v59  ;;  %v140_v59 = vand.u32 4294901760, %v139_v9 }
 0x33b   :  { %1484 = vpush %v1139_v61  ;;  %v141_v61 = vsub.f32 %v139_v9, %v140_v59 }
 0x33d   :  { %v142_v0 = vand.u32 4294901760, %v141_v61 }
 0x36c   :  { %s1485_s2 = spop %1484 }
 0x36d   :  { %v1141_v23 = vstv %s1485_s2 }
 0x36e   :  { %v1143_v26 = vmul.f32 0.125, %v1141_v23 }
 0x370   :  { %v1697_v29 = vsub.f32 %v1129_v53, %v1143_v26  ;;  %v62_v53 = vand.u32 4294901760, %v52_v48 }
 0x372   :  { %v1145_v33 = vmul.f32 %v1697_v29, %v1697_v29  ;;  %v145_v56 = vsub.f32 %v52_v48, %v62_v53  ;;  %63 = vmatpush1.msra.mxu0 %v62_v53 }
 0x373   :  { %132 = vmatmul.mubr.f32.vlgmr.msra.gmra.mrb[0].mxu0 %v1734_v57  ;;  %143 = vmatprep.subr.mxu0 %v142_v0 }
 0x374   :  { %v1146_v36 = vsel %vm1130_vm3, %v1145_v33, 0.0  ;;  %v146_v58 = vand.u32 4294901760, %v145_v56  ;;  %212 = vmatprep.mubr.f32.mxu0 %v1594_v50 }
 0x375   :  { %1147 = vadd.xlane.f32.xlu1 %v1146_v36 }
 0x376   :  { %v147_v60 = vsub.f32 %v145_v56, %v146_v58 }
 0x378   :  { %v148_v63 = vand.u32 4294901760, %v147_v60 }
 0x379   :  { %1312 = vmax.xlane.f32.xlu1 %v1311_v39  ;;  %v1762_v39 = vld [vmem:[%s1848_s4] sm:$0xf] }
 0x37a   :  { %149 = vmatpush1.msra.mxu0 %v148_v63 }
 0x37b   :  { %214 = vmatmul.mubr.f32.vlgmr.msra.gmra.mrb[0].mxu0 %v1717_v45  ;;  %222 = vmatprep.subr.mxu0 %v139_v9 }
 0x37c   :  { %225 = vmatpush1.msra.mxu0 %v145_v56  ;;  %288 = vmatprep.mubr.f32.mxu0 %v1594_v50 }
 0x37d   :  { %1251 = vmax.xlane.f32.xlu1 %v1250_v42  ;;  %298 = vmatprep.subr.mxu0 %v60_v54  ;;  %v1595_v42 = vmov 8  }
 0x37e   :  { %1507 = vset.pattern.permute.xlu1 %v1595_v42  ;;  %1508 = vset.pattern.permute.xlu0 %v1595_v42 }
 0x383   :  { %291 = vmatmul.mubr.f32.vlgmr.msra.gmra.mrb[0].mxu0 %v1720_v46 }
 0x384   :  { %300 = vmatpush1.msra.mxu0 %v62_v53  ;;  %363 = vmatprep.mubr.f32.mxu0 %v1594_v50 }
 0x385   :  { %376 = vmatprep.subr.mxu0 %v140_v59 }
 0x38b   :  { %367 = vmatmul.mubr.f32.vlgmr.msra.gmra.mrb[0].mxu0 %v1728_v51 }
 0x38c   :  { %380 = vmatpush1.msra.mxu0 %v146_v58  ;;  %443 = vmatprep.mubr.f32.mxu0 %v1594_v50 }
 0x38d   :  { %452 = vmatprep.subr.mxu0 %v60_v54 }
 0x393   :  { %445 = vmatmul.mubr.f32.vlgmr.msra.gmra.mrb[0].mxu0 %v1717_v45 }
 0x394   :  { %454 = vmatpush1.msra.mxu0 %v62_v53  ;;  %517 = vmatprep.mubr.f32.mxu0 %v1594_v50 }
 0x39b   :  { %519 = vmatmul.mubr.f32.vlgmr.msra.gmra.mrb[0].mxu0 %v1717_v45 }
 0x402   :  { %v1148_v1 = vpop.xlane.xlu1 %1147 }
 0x403   :  { %v1149_v2 = vrot.slane %v1148_v1, 4 }
 0x405   :  { %v1150_v3 = vadd.f32 %v1149_v2, %v1148_v1 }
 0x406   :  { %v1313_v4 = vpop.xlane.xlu1 %1312 }
 0x407   :  { %v1151_v5 = vrot.slane %v1150_v3, 2  ;;  %v1314_v7 = vsub.f32 %v1704_v37, %v1313_v4  ;;  %v1315_v8 = vsub.f32 %v1701_v34, %v1313_v4  ;;  %v1165_v34 = vrot.slane %v1682_v49, 2 }
 0x408   :  { %v1171_v37 = vsub.s32 0, %v1647_v6 }
 0x409   :  { %v1316_v11 = vmul.f32 1.442695, %v1314_v7  ;;  %v1318_v13 = vmul.f32 1.442695, %v1315_v8  ;;  %v1152_v14 = vadd.f32 %v1151_v5, %v1150_v3 }
 0x40a   :  { %v1252_v15 = vpop.xlane.xlu1 %1251 }
 0x40b   :  { %1523 = vpow2.f32 %v1316_v11  ;;  %v1253_v16 = vsub.f32 %v1710_v41, %v1252_v15  ;;  %v1254_v12 = vsub.f32 %v1708_v40, %v1252_v15  ;;  %v1153_v17 = vrot.slane %v1152_v14, 1 }
 0x40c   :  { %1525 = vpow2.f32 %v1318_v13 }
 0x40d   :  { %v1255_v18 = vmul.f32 1.442695, %v1253_v16  ;;  %v1257_v19 = vmul.f32 1.442695, %v1254_v12  ;;  %v1154_v10 = vadd.f32 %v1153_v17, %v1152_v14 }
 0x40f   :  { %1527 = vpow2.f32 %v1255_v18  ;;  %1486 = vpush %v1154_v10 }
 0x410   :  { %1529 = vpow2.f32 %v1257_v19 }
 0x415   :  { %v1524_v20 = vpop.eup %1523 }
 0x416   :  { %v1526_v21 = vpop.eup %1525 }
 0x417   :  { %v1320_v22 = vadd.f32 %v1526_v21, %v1524_v20 }
 0x419   :  { %v1528_v23 = vpop.eup %1527  ;;  %1321 = vadd.xlane.f32.xlu0 %v1320_v22 }
 0x41a   :  { %v1530_v24 = vpop.eup %1529 }
 0x41b   :  { %v1259_v25 = vadd.f32 %v1530_v24, %v1528_v23 }
 0x41d   :  { %1260 = vadd.xlane.f32.xlu1 %v1259_v25 }
 0x440   :  { %s1487_s5 = spop %1486 }
 0x441   :  { %v1156_v26 = vstv %s1487_s5 }
 0x442   :  { %v1157_v27 = vmul.f32 0.125, %v1156_v26 }
 0x444   :  { %v1158_v28 = vadd.f32 1e-05, %v1157_v27 }
 0x446   :  { %1531 = vrsqrt.f32 %v1158_v28 }
 0x450   :  { %v1532_v32 = vpop.eup %1531 }
 0x451   :  { %v1160_v33 = vmul.f32 %v1532_v32, %v1697_v29 }
 0x453   :  { %v1164_v35 = vmul.f32 %v1162_v30, %v1160_v33 }
 0x455   :  { %v1167_v36 = vadd.f32 %v1165_v34, %v1164_v35 }
 0x457   :  { %v1168_v38 = vmax.f32 %v1167_v36, 0.0 }
 0x459   :  { %v1172_v40 = vrot.slane %v1168_v38, %v1171_v37 }
 0x45b   :  { %v1173_v29 = vmul.f32 %v1172_v40, %v1762_v39 }
 0x45d   :  { %v1175_v41 = vsel %vm1174_vm6, %v1173_v29, 0.0 }
 0x45e   :  { %1176 = vadd.xlane.f32.xlu0 %v1175_v41 }
 0x46e   :  { %v520_v16 = vpop.f32.mrb[0].mxu0 }
 0x46f   :  { %v522_v12 = vpop.f32.mrb[1].mxu0 }
 0x4a6   :  { %v1322_v43 = vpop.xlane.xlu0 %1321 }
 0x4a7   :  { %1533 = vrcp.f32 %v1322_v43 }
 0x4aa   :  { %v1261_v44 = vpop.xlane.xlu1 %1260 }
 0x4ab   :  { %1535 = vrcp.f32 %v1261_v44 }
 0x4b1   :  { %v1534_v47 = vpop.eup %1533 }
 0x4b2   :  { %v1324_v48 = vmul.f32 %v1534_v47, %v1322_v43 }
 0x4b4   :  { %v1325_v52 = vsub.f32 2.0, %v1324_v48 }
 0x4b5   :  { %v1536_v53 = vpop.eup %1535 }
 0x4b6   :  { %v1326_v54 = vmul.f32 %v1534_v47, %v1325_v52  ;;  %v1263_v55 = vmul.f32 %v1536_v53, %v1261_v44 }
 0x4b8   :  { %v1327_v56 = vmul.f32 %v1524_v20, %v1326_v54  ;;  %v1328_v9 = vmul.f32 %v1526_v21, %v1326_v54  ;;  %v1264_v58 = vsub.f32 2.0, %v1263_v55 }
 0x4ba   :  { %v1265_v59 = vmul.f32 %v1536_v53, %v1264_v58  ;;  %v1331_v60 = vcombine.low %v1327_v56, %v1328_v9 }
 0x4bc   :  { %v1266_v61 = vmul.f32 %v1528_v23, %v1265_v59  ;;  %v1267_v63 = vmul.f32 %v1530_v24, %v1265_v59  ;;  %v1332_v0 = vrot.slane %v1331_v60, 6 }
 0x4be   :  { %v1334_v1 = vmul.f32 %v1332_v0, %v1686_v62  ;;  %v1270_v2 = vcombine.low %v1266_v61, %v1267_v63 }
 0x4c0   :  { %v1336_v3 = vcombine.high %v1334_v1, %v1334_v1  ;;  %v1272_v4 = vmul.f32 %v1270_v2, %v1686_v62  ;;  %v1338_v5 = vsel %vm1112_vm1, %v1334_v1, 0.0 }
 0x4c2   :  { %v1339_v7 = vsel %vm1112_vm1, %v1336_v3, 0.0  ;;  %v1274_v8 = vcombine.high %v1272_v4, %v1272_v4  ;;  %v1276_v13 = vsel %vm1006_vm0, %v1272_v4, 0.0 }
 0x4c3   :  { %v1340_v11 = vadd.f32 %v1339_v7, %v1338_v5 }
 0x4c4   :  { %v1277_v14 = vsel %vm1006_vm0, %v1274_v8, 0.0 }
 0x4c5   :  { %1341 = vadd.xlane.f32.xlu0 %v1340_v11  ;;  %v1278_v15 = vadd.f32 %v1277_v14, %v1276_v13 }
 0x4c7   :  { %1279 = vadd.xlane.f32.xlu1 %v1278_v15 }
 0x4eb   :  { %v1177_v17 = vpop.xlane.xlu0 %1176 }
 0x4ec   :  { %v1178_v18 = vadd.f32 %v1177_v17, %v1762_v39 }
 0x4ee   :  { %1181 = vperm.xlu1 %1507, %v1178_v18  }
 0x552   :  { %v1342_v19 = vpop.xlane.xlu0 %1341 }
 0x553   :  { %v1343_v10 = vmul.f32 %v1342_v19, %v1673_v31 }
 0x554   :  { %v1280_v20 = vpop.xlane.xlu1 %1279 }
 0x555   :  { %v1281_v21 = vmul.f32 %v1280_v20, %v1673_v31  ;;  %v1345_v23 = vrot.slane %v1343_v10, 2 }
 0x557   :  { %v1282_v22 = vsel %vm1053_vm2, %v1281_v21, 0.0  ;;  %v1347_v25 = vsel %vm1053_vm2, %v1345_v23, 0.0 }
 0x558   :  { %v1283_v24 = vrot.slane %v1282_v22, 4  ;;  %v1348_v27 = vrot.slane %v1347_v25, 4 }
 0x55a   :  { %v1284_v26 = vadd.f32 %v1283_v24, %v1282_v22  ;;  %v1349_v32 = vadd.f32 %v1348_v27, %v1347_v25 }
 0x55c   :  { %v1285_v28 = vrot.slane %v1284_v26, 2  ;;  %v1350_v35 = vrot.slane %v1349_v32, 2 }
 0x55e   :  { %v1286_v33 = vadd.f32 %v1285_v28, %v1284_v26  ;;  %v1351_v38 = vadd.f32 %v1350_v35, %v1349_v32 }
 0x560   :  { %v1287_v36 = vrot.slane %v1286_v33, 1  ;;  %v1352_v42 = vrot.slane %v1351_v38, 1 }
 0x562   :  { %v1288_v31 = vadd.f32 %v1287_v36, %v1286_v33  ;;  %v1353_v56 = vadd.f32 %v1352_v42, %v1351_v38 }
 0x564   :  { %v1289_v55 = vadd.f32 %v1288_v31, %v1682_v49 }
 0x566   :  { %v1354_v58 = vadd.f32 %v1353_v56, %v1289_v55 }
 0x568   :  { %v1355_v59 = vsel %vm1130_vm3, %v1354_v58, 0.0 }
 0x56d   :  { %v1182_v40 = vpop.permute.xlu1 %1181 }
 0x56e   :  { %v1779_v29 = vadd.f32 %v1182_v40, %v520_v16  ;;  %v1781_v41 = vadd.f32 %v1182_v40, %v522_v12 }
 0x570   :  { %v1186_v43 = vsel %vm51_vm5, %v1779_v29, 0.0  ;;  %v1187_v44 = vsel %vm51_vm5, %v1781_v41, 0.0  ;;  %v1199_v47 = vmul.f32 %v1779_v29, %v1779_v29  ;;  %v1200_v48 = vmul.f32 %v1781_v41, %v1781_v41 }
 0x571   :  { %v1188_v52 = vadd.f32 %v1187_v44, %v1186_v43 }
 0x572   :  { %v1201_v53 = vsel %vm51_vm5, %v1199_v47, 0.0  ;;  %v1202_v54 = vsel %vm51_vm5, %v1200_v48, 0.0 }
 0x573   :  { %1189 = vadd.xlane.f32.xlu0 %v1188_v52  ;;  %v1203_v9 = vadd.f32 %v1202_v54, %v1201_v53  ;;  %v46_v52 = vcombine.high %v1686_v62, %v1686_v62  ;;  %v56_v53 = vsel %vm51_vm5, %v1686_v62, 0 }
 0x574   :  { %v527_v54 = vand.u32 4294901760, %v56_v53 }
 0x575   :  { %v58_v55 = vsel %vm51_vm5, %v46_v52, 0 }
 0x576   :  { %v525_v56 = vand.u32 4294901760, %v58_v55 }
 0x577   :  { %1204 = vadd.xlane.f32.xlu0 %v1203_v9 }
 0x578   :  { %526 = vmatprep.subr.mxu1 %v525_v56 }
 0x579   :  { %528 = vmatpush1.msra.mxu1 %v527_v54 }
 0x57a   :  { %597 = vmatmul.mubr.f32.vlgmr.msra.gmra.mrb[0].mxu1 %v1734_v57 }
 0x57b   :  { %1356 = vadd.xlane.f32.xlu0 %v1355_v59  ;;  %677 = vmatprep.mubr.f32.mxu1 %v1594_v50 }
 0x600   :  { %v1190_v60 = vpop.xlane.xlu0 %1189 }
 0x601   :  { %v1191_v61 = vrot.slane %v1190_v60, 4 }
 0x603   :  { %v1192_v63 = vadd.f32 %v1191_v61, %v1190_v60 }
 0x604   :  { %v1205_v0 = vpop.xlane.xlu0 %1204 }
 0x605   :  { %v1193_v1 = vrot.slane %v1192_v63, 2  ;;  %v1206_v2 = vrot.slane %v1205_v0, 4 }
 0x607   :  { %v1207_v3 = vadd.f32 %v1206_v2, %v1205_v0  ;;  %v1194_v4 = vadd.f32 %v1193_v1, %v1192_v63 }
 0x608   :  { %v1357_v5 = vpop.xlane.xlu0 %1356 }
 0x609   :  { %v1208_v7 = vrot.slane %v1207_v3, 2  ;;  %v1358_v8 = vrot.slane %v1357_v5, 4  ;;  %v1195_v11 = vrot.slane %v1194_v4, 1 }
 0x60b   :  { %v1359_v13 = vadd.f32 %v1358_v8, %v1357_v5  ;;  %v1196_v14 = vadd.f32 %v1195_v11, %v1194_v4  ;;  %v1209_v15 = vadd.f32 %v1208_v7, %v1207_v3 }
 0x60d   :  { %v1360_v16 = vrot.slane %v1359_v13, 2  ;;  %1488 = vpush %v1196_v14  ;;  %v1210_v12 = vrot.slane %v1209_v15, 1 }
 0x60f   :  { %v1211_v17 = vadd.f32 %v1210_v12, %v1209_v15  ;;  %v1361_v18 = vadd.f32 %v1360_v16, %v1359_v13 }
 0x611   :  { %1490 = vpush %v1211_v17  ;;  %v1362_v19 = vrot.slane %v1361_v18, 1 }
 0x613   :  { %v1363_v10 = vadd.f32 %v1362_v19, %v1361_v18 }
 0x615   :  { %1492 = vpush %v1363_v10 }
 0x63e   :  { %s1489_s4 = spop %1488 }
 0x63f   :  { %v1198_v20 = vstv %s1489_s4 }
 0x640   :  { %v1214_v21 = vmul.f32 0.0009765625, %v1198_v20 }
 0x642   :  { %s1491_s16 = spop %1490  ;;  %v1216_v24 = vmul.f32 %v1214_v21, %v1214_v21  ;;  %v1219_v38 = vsub.f32 %v1779_v29, %v1214_v21  ;;  %v1220_v40 = vsub.f32 %v1781_v41, %v1214_v21  ;;  %v610_v29 = vsub.f32 %v56_v53, %v527_v54 }
 0x643   :  { %v1213_v22 = vstv %s1491_s16  ;;  %v604_v41 = vsub.f32 %v58_v55, %v525_v56 }
 0x644   :  { %v1215_v23 = vmul.f32 0.0009765625, %v1213_v22  ;;  %v611_v9 = vand.u32 4294901760, %v610_v29 }
 0x646   :  { %v1217_v25 = vsub.f32 %v1215_v23, %v1216_v24  ;;  %s1493_s17 = spop %1492  ;;  %v612_v59 = vsub.f32 %v610_v29, %v611_v9 }
 0x647   :  { %v1365_v26 = vstv %s1493_s17 }
 0x648   :  { %v1218_v27 = vmax.f32 %v1217_v25, 0.0  ;;  %v1366_v28 = vmul.f32 0.125, %v1365_v26  ;;  %v613_v61 = vand.u32 4294901760, %v612_v59 }
 0x64a   :  { %v1221_v32 = vadd.f32 1e-05, %v1218_v27  ;;  %v1795_v33 = vsub.f32 %v1354_v58, %v1366_v28  ;;  %v605_v58 = vand.u32 4294901760, %v604_v41 }
 0x64c   :  { %1537 = vrsqrt.f32 %v1221_v32  ;;  %v1368_v35 = vmul.f32 %v1795_v33, %v1795_v33  ;;  %v606_v60 = vsub.f32 %v604_v41, %v605_v58 }
 0x64e   :  { %v1369_v36 = vsel %vm1130_vm3, %v1368_v35, 0.0  ;;  %v607_v63 = vand.u32 4294901760, %v606_v60 }
 0x64f   :  { %1370 = vadd.xlane.f32.xlu0 %v1369_v36 }
 0x650   :  { %608 = vmatprep.subr.mxu1 %v607_v63 }
 0x651   :  { %614 = vmatpush1.msra.mxu1 %v613_v61 }
 0x652   :  { %679 = vmatmul.mubr.f32.vlgmr.msra.gmra.mrb[0].mxu1 %v1717_v45  ;;  %687 = vmatprep.subr.mxu1 %v604_v41 }
 0x653   :  { %690 = vmatpush1.msra.mxu1 %v610_v29  ;;  %753 = vmatprep.mubr.f32.mxu1 %v1594_v50 }
 0x654   :  { %763 = vmatprep.subr.mxu1 %v525_v56 }
 0x656   :  { %v1538_v31 = vpop.eup %1537 }
 0x657   :  { %v1223_v42 = vmul.f32 %v1538_v31, %v1219_v38  ;;  %v1224_v43 = vmul.f32 %v1538_v31, %v1220_v40 }
 0x659   :  { %v1225_v44 = vmax.f32 %v1223_v42, 0.0  ;;  %v1226_v47 = vmax.f32 %v1224_v43, 0.0 }
 0x65a   :  { %756 = vmatmul.mubr.f32.vlgmr.msra.gmra.mrb[0].mxu1 %v1720_v46 }
 0x65b   :  { %v1229_v48 = vcombine.low %v1225_v44, %v1226_v47  ;;  %765 = vmatpush1.msra.mxu1 %v527_v54  ;;  %828 = vmatprep.mubr.f32.mxu1 %v1594_v50 }
 0x65c   :  { %841 = vmatprep.subr.mxu1 %v605_v58 }
 0x65d   :  { %1231 = vst [vmem:[#allocation5] sm:$0xff] %v1229_v48 }
 0x662   :  { %832 = vmatmul.mubr.f32.vlgmr.msra.gmra.mrb[0].mxu1 %v1728_v51 }
 0x663   :  { %845 = vmatpush1.msra.mxu1 %v611_v9  ;;  %908 = vmatprep.mubr.f32.mxu1 %v1594_v50 }
 0x664   :  { %917 = vmatprep.subr.mxu1 %v525_v56 }
 0x66a   :  { %910 = vmatmul.mubr.f32.vlgmr.msra.gmra.mrb[0].mxu1 %v1717_v45 }
 0x66b   :  { %919 = vmatpush1.msra.mxu1 %v527_v54  ;;  %982 = vmatprep.mubr.f32.mxu1 %v1594_v50 }
 0x672   :  { %984 = vmatmul.mubr.f32.vlgmr.msra.gmra.mrb[0].mxu1 %v1717_v45 }
 0x6dc   :  { %v1371_v62 = vpop.xlane.xlu0 %1370 }
 0x6dd   :  { %v1372_v57 = vrot.slane %v1371_v62, 4 }
 0x6df   :  { %v1373_v46 = vadd.f32 %v1372_v57, %v1371_v62 }
 0x6e1   :  { %v1374_v0 = vrot.slane %v1373_v46, 2 }
 0x6e3   :  { %v1375_v1 = vadd.f32 %v1374_v0, %v1373_v46 }
 0x6e5   :  { %v1376_v2 = vrot.slane %v1375_v1, 1 }
 0x6e7   :  { %v1377_v3 = vadd.f32 %v1376_v2, %v1375_v1 }
 0x6e9   :  { %1494 = vpush %v1377_v3 }
 0x71a   :  { %s1495_s18 = spop %1494 }
 0x71b   :  { %v1379_v51 = vstv %s1495_s18 }
 0x71c   :  { %v1380_v4 = vmul.f32 0.125, %v1379_v51 }
 0x71e   :  { %v1381_v5 = vadd.f32 1e-05, %v1380_v4 }
 0x720   :  { %1539 = vrsqrt.f32 %v1381_v5 }
 0x72a   :  { %v1540_v7 = vpop.eup %1539 }
 0x72b   :  { %v1383_v8 = vmul.f32 %v1540_v7, %v1795_v33 }
 0x72d   :  { %v1384_v50 = vmul.f32 %v1383_v8, %v1162_v30 }
 0x72f   :  { %v1385_v45 = vadd.f32 %v1384_v50, %v1165_v34 }
 0x731   :  { %v1386_v11 = vmax.f32 %v1385_v45, 0.0 }
 0x733   :  { %v1390_v13 = vrot.slane %v1386_v11, %v1171_v37 }
 0x735   :  { %v1391_v14 = vmul.f32 %v1390_v13, %v1762_v39 }
 0x737   :  { %v1392_v15 = vsel %vm1174_vm6, %v1391_v14, 0.0 }
 0x738   :  { %1393 = vadd.xlane.f32.xlu1 %v1392_v15 }
 0x745   :  { %v985_v16 = vpop.f32.mrb[0].mxu1 }
 0x746   :  { %v987_v12 = vpop.f32.mrb[1].mxu1 }
 0x7c5   :  { %v1394_v17 = vpop.xlane.xlu1 %1393 }
 0x7c6   :  { %v1395_v18 = vadd.f32 %v1394_v17, %v1762_v39 }
 0x7c8   :  { %1398 = vperm.xlu0 %1508, %v1395_v18  }
 0x847   :  { %v1399_v19 = vpop.permute.xlu0 %1398 }
 0x848   :  { %v1401_v30 = vadd.f32 %v1399_v19, %v985_v16  ;;  %v1402_v10 = vadd.f32 %v1399_v19, %v987_v12 }
 0x84a   :  { %v1403_v49 = vsel %vm51_vm5, %v1401_v30, 0.0  ;;  %v1404_v34 = vsel %vm51_vm5, %v1402_v10, 0.0  ;;  %v1416_v6 = vmul.f32 %v1401_v30, %v1401_v30  ;;  %v1417_v37 = vmul.f32 %v1402_v10, %v1402_v10 }
 0x84b   :  { %v1405_v20 = vadd.f32 %v1404_v34, %v1403_v49 }
 0x84c   :  { %v1418_v21 = vsel %vm51_vm5, %v1416_v6, 0.0  ;;  %v1419_v22 = vsel %vm51_vm5, %v1417_v37, 0.0 }
 0x84d   :  { %1406 = vadd.xlane.f32.xlu1 %v1405_v20  ;;  %v1420_v23 = vadd.f32 %v1419_v22, %v1418_v21 }
 0x851   :  { %1421 = vadd.xlane.f32.xlu1 %v1420_v23 }
 0x8da   :  { %v1407_v24 = vpop.xlane.xlu1 %1406 }
 0x8db   :  { %v1408_v39 = vrot.slane %v1407_v24, 4 }
 0x8dd   :  { %v1409_v25 = vadd.f32 %v1408_v39, %v1407_v24 }
 0x8de   :  { %v1422_v26 = vpop.xlane.xlu1 %1421 }
 0x8df   :  { %v1410_v27 = vrot.slane %v1409_v25, 2  ;;  %v1423_v28 = vrot.slane %v1422_v26, 4 }
 0x8e1   :  { %v1424_v32 = vadd.f32 %v1423_v28, %v1422_v26  ;;  %v1411_v33 = vadd.f32 %v1410_v27, %v1409_v25 }
 0x8e3   :  { %v1425_v35 = vrot.slane %v1424_v32, 2  ;;  %v1412_v36 = vrot.slane %v1411_v33, 1 }
 0x8e5   :  { %v1426_v38 = vadd.f32 %v1425_v35, %v1424_v32  ;;  %v1413_v40 = vadd.f32 %v1412_v36, %v1411_v33 }
 0x8e7   :  { %1496 = vpush %v1413_v40  ;;  %v1427_v31 = vrot.slane %v1426_v38, 1 }
 0x8e9   :  { %v1428_v42 = vadd.f32 %v1427_v31, %v1426_v38 }
 0x8eb   :  { %1498 = vpush %v1428_v42 }
 0x918   :  { %s1497_s19 = spop %1496 }
 0x919   :  { %v1415_v43 = vstv %s1497_s19 }
 0x91a   :  { %v1431_v44 = vmul.f32 0.0009765625, %v1415_v43 }
 0x91c   :  { %s1499_s20 = spop %1498  ;;  %v1433_v52 = vmul.f32 %v1431_v44, %v1431_v44  ;;  %v1436_v56 = vsub.f32 %v1401_v30, %v1431_v44  ;;  %v1437_v29 = vsub.f32 %v1402_v10, %v1431_v44 }
 0x91d   :  { %v1430_v47 = vstv %s1499_s20 }
 0x91e   :  { %v1432_v48 = vmul.f32 0.0009765625, %v1430_v47 }
 0x920   :  { %v1434_v53 = vsub.f32 %v1432_v48, %v1433_v52 }
 0x922   :  { %v1435_v54 = vmax.f32 %v1434_v53, 0.0 }
 0x924   :  { %v1438_v55 = vadd.f32 1e-05, %v1435_v54 }
 0x926   :  { %1541 = vrsqrt.f32 %v1438_v55 }
 0x930   :  { %v1542_v41 = vpop.eup %1541 }
 0x931   :  { %v1440_v9 = vmul.f32 %v1542_v41, %v1436_v56  ;;  %v1441_v58 = vmul.f32 %v1542_v41, %v1437_v29 }
 0x933   :  { %v1442_v59 = vmax.f32 %v1440_v9, 0.0  ;;  %v1443_v60 = vmax.f32 %v1441_v58, 0.0 }
 0x935   :  { %v1446_v61 = vcombine.low %v1442_v59, %v1443_v60 }
 0x937   :  { %1448 = vst [vmem:[#allocation5 + $0x8] sm:$0xff] %v1446_v61 }
 0x938   :  { %1576 = shalt.err (!%p1573_p12)
}
 0x939   :  { %s1577_s26 = scalar_lea.hbm %s1850_s6, 256 }
 0x93a   :  { %p1578_p13 = scmp.ne.s32.totalorder %s1850_s6, %s1577_s26  ;;  %p1581_p0 = scmp.lt.u32.totalorder %s1577_s26, %s1850_s6 }
 0x93c   :  { %p1583_p1 = pnand %p1581_p0, %p1578_p13 }
 0x93e   :  { %1586 = shalt.err (!%p1583_p1)
}
 0x93f   :  { %1458 = dma.vmem_to_hbm [thread:$0]  %s1456_s22, 256, %s1850_s6, [#allocation4]  }
 0x940   :  { %1589 = dma.done.wait [#allocation4], 256  }
 0x941   :  { %1590 = vsyncadd [#allocation4], 4294967040 }
 0x942   :  { %1462 = vsyncpa [#allocation3], 1 }
 0x943   :  { %1463 = vsyncpa [#allocation4], 1 }

</bundles_post_ra>
